<compile_context>
chip_gen: v5e
topology: v5e:2x2
jax: 0.10.0
libtpu: 0.0.40
codegen_flags: <defaults>
</compile_context>

<pallas_src>
import math
from functools import partial

import jax
import jax.numpy as jnp
from jax.experimental import pallas as pl
from jax.experimental.pallas import tpu as pltpu


def _gelu_exact(x):
    # nn.GELU default is the exact (erf) formulation.
    return 0.5 * x * (1.0 + jax.lax.erf(x * (1.0 / math.sqrt(2.0))))


def block_kernel(x_ref, g1_ref, be1_ref, wqkv_ref, wproj_ref, bproj_ref,
                 g2_ref, be2_ref, w1_ref, bi1_ref, w2_ref, bi2_ref, o_ref,
                 *, num_heads, scale, seq_len, batch_per_step):
    M, C = x_ref.shape                      # M = batch_per_step * seq_len fused rows
    H = num_heads
    d = C // H
    N = seq_len
    Bb = batch_per_step
    eps = 1e-5
    cdt = wqkv_ref.dtype                    # MXU operand dtype (bf16); acc/stats in f32.

    x = x_ref[...].astype(jnp.float32)      # (M, C)

    def layernorm(t, g, b):
        mu = jnp.mean(t, axis=-1, keepdims=True)
        var = jnp.mean(jnp.square(t - mu), axis=-1, keepdims=True)
        return (t - mu) * jax.lax.rsqrt(var + eps) * g + b

    # ---------------- Attention branch ----------------
    xn = layernorm(x, g1_ref[0], be1_ref[0])
    qkv = jnp.dot(xn.astype(cdt), wqkv_ref[...],
                  preferred_element_type=jnp.float32)               # (M, 3C) f32

    q2d = qkv[:, 0:C] * scale               # softmax scale folded into q
    k2d = qkv[:, C:2 * C]
    v2d = qkv[:, 2 * C:3 * C]

    def head_stack(t2d):                    # (M, C) -> (Bb*H, N, d), head-major batch
        return jnp.stack(
            [t2d[b * N:(b + 1) * N, h * d:(h + 1) * d]
             for b in range(Bb) for h in range(H)], axis=0)

    q = head_stack(q2d).astype(cdt)
    k = head_stack(k2d).astype(cdt)
    v = head_stack(v2d).astype(cdt)

    # Batched (batch*heads) attention: no per-head matmul loop, no k transpose.
    s = jnp.einsum('bqd,bkd->bqk', q, k,
                   preferred_element_type=jnp.float32)              # (Bb*H, N, N)
    s = s - jnp.max(s, axis=-1, keepdims=True)
    p = jnp.exp(s)
    p = p * pl.reciprocal(jnp.sum(p, axis=-1, keepdims=True), approx=True)
    o = jnp.einsum('bqk,bkd->bqd', p.astype(cdt), v,
                   preferred_element_type=jnp.float32)              # (Bb*H, N, d)

    attn_out = jnp.concatenate(
        [jnp.concatenate([o[b * H + h] for h in range(H)], axis=-1)  # (N, C)
         for b in range(Bb)], axis=0)                                # (M, C)

    proj = jnp.dot(attn_out.astype(cdt), wproj_ref[...],
                   preferred_element_type=jnp.float32) + bproj_ref[0]
    x1 = x + proj                                                    # residual 1

    # ---------------- MLP branch ----------------
    xn2 = layernorm(x1, g2_ref[0], be2_ref[0])
    h1 = jnp.dot(xn2.astype(cdt), w1_ref[...],
                 preferred_element_type=jnp.float32) + bi1_ref[0]
    h1 = _gelu_exact(h1)
    h2 = jnp.dot(h1.astype(cdt), w2_ref[...],
                 preferred_element_type=jnp.float32) + bi2_ref[0]

    o_ref[...] = (x1 + h2).astype(o_ref.dtype)                       # residual 2


def _vmem_limit_bytes(rows, seq_len, batch_per_step, C, Hd, num_heads,
                      w_itemsize, weight_buffers):
    f32 = 4
    weights = (C * 3 * C + C * C + C * Hd + Hd * C) * w_itemsize * weight_buffers
    small_params = (6 * C + Hd) * f32 * 2
    x_io = 2 * rows * C * f32 * 2                                     # x + out, 2 buffers
    acts = f32 * (3 * rows * C                                        # qkv
                  + 3 * rows * C                                      # stacked q, k, v
                  + 2 * batch_per_step * num_heads * seq_len * seq_len  # scores + probs
                  + 3 * rows * C                                      # attn_out/proj/x1
                  + 2 * rows * Hd                                     # mlp hidden
                  + 2 * rows * C)                                     # mlp out / sum
    est = weights + small_params + x_io + acts
    return int(min(max(2 * est, 32 * 1024 * 1024), 128 * 1024 * 1024))


def vit_block(x, params, num_heads, compute_dtype=jnp.bfloat16, max_rows_per_step=256):
    """Pallas TPU forward of the vissl ViT Block.

    Weights in `params` are stored transposed so the kernel computes x @ W.
    `compute_dtype` is the MXU operand dtype (bf16 by default); accumulation and
    LayerNorm/softmax statistics stay in float32.
    """
    B, N, C = x.shape
    Hd = params["w1"].shape[1]
    scale = float((C // num_heads) ** -0.5)

    # Fuse batch elements per grid step so the matmul row count M = Bb*N fills the
    # MXU and the per-grid-step overhead is amortized (ViT sequences are short).
    Bb = 1
    for cand in range(1, B + 1):
        if B % cand == 0 and cand * N <= max(max_rows_per_step, N):
            Bb = cand
    if (Bb * N) % 8 != 0 and Bb != B:
        Bb = B                       # keep block == full array dims if not sublane-aligned
    grid = (B // Bb,)
    Mb = Bb * N

    # Present x / out as a lane-dense 2-D (rows, C) slab; this reshape is a free XLA op.
    # (For production ViT shapes, pad N to a multiple of 8 and C/hidden to 128 here.)
    x2d = x.reshape(B * N, C)

    # bf16 (MXU-native) weights; LayerNorm gammas/betas and biases stay f32.
    wqkv = params["wqkv"].astype(compute_dtype)
    wproj = params["wproj"].astype(compute_dtype)
    w1 = params["w1"].astype(compute_dtype)
    w2 = params["w2"].astype(compute_dtype)

    kernel = partial(block_kernel, num_heads=num_heads, scale=scale,
                     seq_len=N, batch_per_step=Bb)
    args = (x2d, params["g1"], params["be1"], wqkv, wproj, params["bproj"],
            params["g2"], params["be2"], w1, params["bi1"], w2, params["bi2"])

    def build(single_buffer_weights):
        def const_spec(shape):
            # Weights/params are grid-invariant (constant index_map): single-buffer
            # them so they are not double-buffered in VMEM.
            if single_buffer_weights:
                return pl.BlockSpec(shape, lambda g: (0,) * len(shape),
                                    pipeline_mode=pl.Buffered(1))
            return pl.BlockSpec(shape, lambda g: (0,) * len(shape))

        vmem_limit = _vmem_limit_bytes(
            Mb, N, Bb, C, Hd, num_heads,
            w_itemsize=jnp.dtype(compute_dtype).itemsize,
            weight_buffers=1 if single_buffer_weights else 2)

        return pl.pallas_call(
            kernel,
            out_shape=jax.ShapeDtypeStruct((B * N, C), x.dtype),
            grid=grid,
            in_specs=[
                pl.BlockSpec((Mb, C), lambda g: (g, 0)),   # x rows
                const_spec((1, C)),                        # norm1 gamma
                const_spec((1, C)),                        # norm1 beta
                const_spec((C, 3 * C)),                    # qkv weight (transposed)
                const_spec((C, C)),                        # proj weight (transposed)
                const_spec((1, C)),                        # proj bias
                const_spec((1, C)),                        # norm2 gamma
                const_spec((1, C)),                        # norm2 beta
                const_spec((C, Hd)),                       # fc1 weight (transposed)
                const_spec((1, Hd)),                       # fc1 bias
                const_spec((Hd, C)),                       # fc2 weight (transposed)
                const_spec((1, C)),                        # fc2 bias
            ],
            out_specs=pl.BlockSpec((Mb, C), lambda g: (g, 0)),
            compiler_params=pltpu.CompilerParams(
                dimension_semantics=("parallel",),
                vmem_limit_bytes=vmem_limit),
        )

    last_err = None
    for single_buffer in (True, False):     # fall back if Buffered(1) is unsupported
        try:
            out2d = jax.block_until_ready(build(single_buffer)(*args))
            return out2d.reshape(B, N, C)
        except Exception as err:            # noqa: BLE001 - compile-time fallback
            last_err = err
    raise last_err


def ref_block(x, p, num_heads, compute_dtype=jnp.float32):
    """Pure-JAX reference mirroring the PyTorch forward, with the same optional
    low-precision matmul-operand casts / f32 accumulation as the kernel."""
    B, N, C = x.shape
    d = C // num_heads
    scale = d ** -0.5
    cdt = compute_dtype

    def ln(t, g, b):
        mu = t.mean(-1, keepdims=True)
        var = ((t - mu) ** 2).mean(-1, keepdims=True)
        return (t - mu) * jax.lax.rsqrt(var + 1e-5) * g + b

    def mm(a, w):
        return jnp.dot(a.astype(cdt), w.astype(cdt),
                       preferred_element_type=jnp.float32)

    xn = ln(x, p["g1"][0], p["be1"][0])
    qkv = mm(xn, p["wqkv"]).reshape(B, N, 3, num_heads, d).transpose(2, 0, 3, 1, 4)
    q, k, v = qkv[0] * scale, qkv[1], qkv[2]
    s = jnp.einsum('bhqd,bhkd->bhqk', q.astype(cdt), k.astype(cdt),
                   preferred_element_type=jnp.float32)
    attn = jax.nn.softmax(s, axis=-1)
    o = jnp.einsum('bhqk,bhkd->bhqd', attn.astype(cdt), v.astype(cdt),
                   preferred_element_type=jnp.float32)
    o = o.transpose(0, 2, 1, 3).reshape(B, N, C)
    x1 = x + (mm(o, p["wproj"]) + p["bproj"][0])
    xn2 = ln(x1, p["g2"][0], p["be2"][0])
    h = jax.nn.gelu(mm(xn2, p["w1"]) + p["bi1"][0], approximate=False)
    h = mm(h, p["w2"]) + p["bi2"][0]
    return x1 + h


if __name__ == "__main__":
    B, N, C = 2, 8, 32
    num_heads = 4
    mlp_ratio = 4.0
    Hd = int(C * mlp_ratio)

    key = jax.random.PRNGKey(0)
    ks = jax.random.split(key, 8)

    params = {
        "g1":    jnp.ones((1, C), jnp.float32),
        "be1":   jnp.zeros((1, C), jnp.float32),
        # weights stored already transposed so the kernel computes x @ W
        "wqkv":  0.05 * jax.random.normal(ks[0], (C, 3 * C), jnp.float32),
        "wproj": 0.05 * jax.random.normal(ks[1], (C, C), jnp.float32),
        "bproj": 0.01 * jax.random.normal(ks[2], (1, C), jnp.float32),
        "g2":    jnp.ones((1, C), jnp.float32),
        "be2":   jnp.zeros((1, C), jnp.float32),
        "w1":    0.05 * jax.random.normal(ks[3], (C, Hd), jnp.float32),
        "bi1":   0.01 * jax.random.normal(ks[4], (1, Hd), jnp.float32),
        "w2":    0.05 * jax.random.normal(ks[5], (Hd, C), jnp.float32),
        "bi2":   0.01 * jax.random.normal(ks[6], (1, C), jnp.float32),
    }

    x = jax.random.normal(ks[7], (B, N, C), jnp.float32)

    out = vit_block(x, params, num_heads, compute_dtype=jnp.bfloat16)
    out = jax.block_until_ready(out)
    assert out.shape == (B, N, C)

    # Check against a reference applying the same bf16-operand / f32-accumulation
    # casts (validates the kernel itself) ...
    ref_bf16 = ref_block(x, params, num_heads, compute_dtype=jnp.bfloat16)
    assert jnp.allclose(out, ref_bf16, atol=2e-3, rtol=2e-3), \
        f"max abs err vs bf16 ref {jnp.max(jnp.abs(out - ref_bf16))}"

    # ... and a looser sanity check against the pure-f32 PyTorch-equivalent math
    # (bounds the precision cost of the bf16 weight/operand optimization).
    ref_f32 = ref_block(x, params, num_heads, compute_dtype=jnp.float32)
    assert jnp.allclose(out, ref_f32, atol=5e-2, rtol=5e-2), \
        f"max abs err vs f32 ref {jnp.max(jnp.abs(out - ref_f32))}"

    print("KERNEL_OK")
</pallas_src>

<mosaic_0001>
module attributes {stable_mosaic.version = 11 : i64} {
  func.func @block_kernel(%arg0: i32, %arg1: memref<16x32xf32, #tpu.memory_space<vmem>>, %arg2: memref<1x32xf32, #tpu.memory_space<vmem>>, %arg3: memref<1x32xf32, #tpu.memory_space<vmem>>, %arg4: memref<32x96xbf16, #tpu.memory_space<vmem>>, %arg5: memref<32x32xbf16, #tpu.memory_space<vmem>>, %arg6: memref<1x32xf32, #tpu.memory_space<vmem>>, %arg7: memref<1x32xf32, #tpu.memory_space<vmem>>, %arg8: memref<1x32xf32, #tpu.memory_space<vmem>>, %arg9: memref<32x128xbf16, #tpu.memory_space<vmem>>, %arg10: memref<1x128xf32, #tpu.memory_space<vmem>>, %arg11: memref<128x32xbf16, #tpu.memory_space<vmem>>, %arg12: memref<1x32xf32, #tpu.memory_space<vmem>>, %arg13: memref<16x32xf32, #tpu.memory_space<vmem>>) attributes {dimension_semantics = [#tpu.dimension_semantics<parallel>], iteration_bounds = array<i64: 1>, scalar_prefetch = 0 : i64, scratch_operands = 0 : i64, tpu.core_type = #tpu.core_type<tc>, window_params = [{transform_indices = @transform_0, window_bounds = array<i64: 16, 32>}, {pipeline_mode = #tpu.pipeline_mode<synchronous>, transform_indices = @transform_1, window_bounds = array<i64: 1, 32>}, {pipeline_mode = #tpu.pipeline_mode<synchronous>, transform_indices = @transform_2, window_bounds = array<i64: 1, 32>}, {pipeline_mode = #tpu.pipeline_mode<synchronous>, transform_indices = @transform_3, window_bounds = array<i64: 32, 96>}, {pipeline_mode = #tpu.pipeline_mode<synchronous>, transform_indices = @transform_4, window_bounds = array<i64: 32, 32>}, {pipeline_mode = #tpu.pipeline_mode<synchronous>, transform_indices = @transform_5, window_bounds = array<i64: 1, 32>}, {pipeline_mode = #tpu.pipeline_mode<synchronous>, transform_indices = @transform_6, window_bounds = array<i64: 1, 32>}, {pipeline_mode = #tpu.pipeline_mode<synchronous>, transform_indices = @transform_7, window_bounds = array<i64: 1, 32>}, {pipeline_mode = #tpu.pipeline_mode<synchronous>, transform_indices = @transform_8, window_bounds = array<i64: 32, 128>}, {pipeline_mode = #tpu.pipeline_mode<synchronous>, transform_indices = @transform_9, window_bounds = array<i64: 1, 128>}, {pipeline_mode = #tpu.pipeline_mode<synchronous>, transform_indices = @transform_10, window_bounds = array<i64: 128, 32>}, {pipeline_mode = #tpu.pipeline_mode<synchronous>, transform_indices = @transform_11, window_bounds = array<i64: 1, 32>}, {transform_indices = @transform_12, window_bounds = array<i64: 16, 32>}]} {
    %c0 = arith.constant 0 : index
    %c0_0 = arith.constant 0 : index
    %0 = vector.load %arg1[%c0, %c0_0] : memref<16x32xf32, #tpu.memory_space<vmem>>, vector<16x32xf32>
    %c0_1 = arith.constant 0 : index
    %c0_2 = arith.constant 0 : index
    %1 = vector.load %arg2[%c0_1, %c0_2] : memref<1x32xf32, #tpu.memory_space<vmem>>, vector<1x32xf32>
    %2 = vector.shape_cast %1 : vector<1x32xf32> to vector<32xf32>
    %c0_3 = arith.constant 0 : index
    %c0_4 = arith.constant 0 : index
    %3 = vector.load %arg3[%c0_3, %c0_4] : memref<1x32xf32, #tpu.memory_space<vmem>>, vector<1x32xf32>
    %4 = vector.shape_cast %3 : vector<1x32xf32> to vector<32xf32>
    %cst = arith.constant dense<0.000000e+00> : vector<16xf32>
    %5 = vector.multi_reduction <add>, %0, %cst [1] : vector<16x32xf32> to vector<16xf32>
    %6 = vector.shape_cast %5 : vector<16xf32> to vector<16x1xf32>
    %cst_5 = arith.constant 3.200000e+01 : f32
    %7 = vector.broadcast %cst_5 : f32 to vector<16x1xf32>
    %8 = arith.divf %6, %7 : vector<16x1xf32>
    %9 = vector.broadcast %8 : vector<16x1xf32> to vector<16x32xf32>
    %10 = arith.subf %0, %9 : vector<16x32xf32>
    %11 = arith.mulf %10, %10 : vector<16x32xf32>
    %cst_6 = arith.constant dense<0.000000e+00> : vector<16xf32>
    %12 = vector.multi_reduction <add>, %11, %cst_6 [1] : vector<16x32xf32> to vector<16xf32>
    %13 = vector.shape_cast %12 : vector<16xf32> to vector<16x1xf32>
    %cst_7 = arith.constant 3.200000e+01 : f32
    %14 = vector.broadcast %cst_7 : f32 to vector<16x1xf32>
    %15 = arith.divf %13, %14 : vector<16x1xf32>
    %16 = vector.broadcast %8 : vector<16x1xf32> to vector<16x32xf32>
    %17 = arith.subf %0, %16 : vector<16x32xf32>
    %cst_8 = arith.constant 9.99999974E-6 : f32
    %18 = vector.broadcast %cst_8 : f32 to vector<16x1xf32>
    %19 = arith.addf %15, %18 : vector<16x1xf32>
    %20 = math.rsqrt %19 : vector<16x1xf32>
    %21 = vector.broadcast %20 : vector<16x1xf32> to vector<16x32xf32>
    %22 = arith.mulf %17, %21 : vector<16x32xf32>
    %23 = vector.shape_cast %2 : vector<32xf32> to vector<1x32xf32>
    %24 = vector.broadcast %23 : vector<1x32xf32> to vector<16x32xf32>
    %25 = arith.mulf %22, %24 : vector<16x32xf32>
    %26 = vector.shape_cast %4 : vector<32xf32> to vector<1x32xf32>
    %27 = vector.broadcast %26 : vector<1x32xf32> to vector<16x32xf32>
    %28 = arith.addf %25, %27 : vector<16x32xf32>
    %29 = arith.truncf %28 : vector<16x32xf32> to vector<16x32xbf16>
    %c0_9 = arith.constant 0 : index
    %c0_10 = arith.constant 0 : index
    %30 = vector.load %arg4[%c0_9, %c0_10] : memref<32x96xbf16, #tpu.memory_space<vmem>>, vector<32x96xbf16>
    %cst_11 = arith.constant dense<0.000000e+00> : vector<16x96xf32>
    %31 = tpu.matmul %29, %30, %cst_11 {dimension_numbers = #tpu.dot_dimension_numbers<[1], [0], [0], [1], [0, 0, 1, 1], [], []>} : vector<16x32xbf16>, vector<32x96xbf16>, vector<16x96xf32> -> vector<16x96xf32>
    %32 = vector.extract_strided_slice %31 {offsets = [0, 0], sizes = [16, 32], strides = [1, 1]} : vector<16x96xf32> to vector<16x32xf32>
    %cst_12 = arith.constant 0.353553385 : f32
    %33 = vector.broadcast %cst_12 : f32 to vector<16x32xf32>
    %34 = arith.mulf %32, %33 : vector<16x32xf32>
    %35 = vector.extract_strided_slice %31 {offsets = [0, 32], sizes = [16, 32], strides = [1, 1]} : vector<16x96xf32> to vector<16x32xf32>
    %36 = vector.extract_strided_slice %31 {offsets = [0, 64], sizes = [16, 32], strides = [1, 1]} : vector<16x96xf32> to vector<16x32xf32>
    %37 = vector.extract_strided_slice %34 {offsets = [0, 0], sizes = [8, 8], strides = [1, 1]} : vector<16x32xf32> to vector<8x8xf32>
    %38 = vector.extract_strided_slice %34 {offsets = [0, 8], sizes = [8, 8], strides = [1, 1]} : vector<16x32xf32> to vector<8x8xf32>
    %39 = vector.extract_strided_slice %34 {offsets = [0, 16], sizes = [8, 8], strides = [1, 1]} : vector<16x32xf32> to vector<8x8xf32>
    %40 = vector.extract_strided_slice %34 {offsets = [0, 24], sizes = [8, 8], strides = [1, 1]} : vector<16x32xf32> to vector<8x8xf32>
    %41 = vector.extract_strided_slice %34 {offsets = [8, 0], sizes = [8, 8], strides = [1, 1]} : vector<16x32xf32> to vector<8x8xf32>
    %42 = vector.extract_strided_slice %34 {offsets = [8, 8], sizes = [8, 8], strides = [1, 1]} : vector<16x32xf32> to vector<8x8xf32>
    %43 = vector.extract_strided_slice %34 {offsets = [8, 16], sizes = [8, 8], strides = [1, 1]} : vector<16x32xf32> to vector<8x8xf32>
    %44 = vector.extract_strided_slice %34 {offsets = [8, 24], sizes = [8, 8], strides = [1, 1]} : vector<16x32xf32> to vector<8x8xf32>
    %45 = vector.shape_cast %37 : vector<8x8xf32> to vector<1x8x8xf32>
    %46 = vector.shape_cast %38 : vector<8x8xf32> to vector<1x8x8xf32>
    %47 = vector.shape_cast %39 : vector<8x8xf32> to vector<1x8x8xf32>
    %48 = vector.shape_cast %40 : vector<8x8xf32> to vector<1x8x8xf32>
    %49 = vector.shape_cast %41 : vector<8x8xf32> to vector<1x8x8xf32>
    %50 = vector.shape_cast %42 : vector<8x8xf32> to vector<1x8x8xf32>
    %51 = vector.shape_cast %43 : vector<8x8xf32> to vector<1x8x8xf32>
    %52 = vector.shape_cast %44 : vector<8x8xf32> to vector<1x8x8xf32>
    %53 = tpu.concatenate %45, %46, %47, %48, %49, %50, %51, %52 in 0 : vector<1x8x8xf32>, vector<1x8x8xf32>, vector<1x8x8xf32>, vector<1x8x8xf32>, vector<1x8x8xf32>, vector<1x8x8xf32>, vector<1x8x8xf32>, vector<1x8x8xf32> -> vector<8x8x8xf32>
    %54 = arith.truncf %53 : vector<8x8x8xf32> to vector<8x8x8xbf16>
    %55 = vector.extract_strided_slice %35 {offsets = [0, 0], sizes = [8, 8], strides = [1, 1]} : vector<16x32xf32> to vector<8x8xf32>
    %56 = vector.extract_strided_slice %35 {offsets = [0, 8], sizes = [8, 8], strides = [1, 1]} : vector<16x32xf32> to vector<8x8xf32>
    %57 = vector.extract_strided_slice %35 {offsets = [0, 16], sizes = [8, 8], strides = [1, 1]} : vector<16x32xf32> to vector<8x8xf32>
    %58 = vector.extract_strided_slice %35 {offsets = [0, 24], sizes = [8, 8], strides = [1, 1]} : vector<16x32xf32> to vector<8x8xf32>
    %59 = vector.extract_strided_slice %35 {offsets = [8, 0], sizes = [8, 8], strides = [1, 1]} : vector<16x32xf32> to vector<8x8xf32>
    %60 = vector.extract_strided_slice %35 {offsets = [8, 8], sizes = [8, 8], strides = [1, 1]} : vector<16x32xf32> to vector<8x8xf32>
    %61 = vector.extract_strided_slice %35 {offsets = [8, 16], sizes = [8, 8], strides = [1, 1]} : vector<16x32xf32> to vector<8x8xf32>
    %62 = vector.extract_strided_slice %35 {offsets = [8, 24], sizes = [8, 8], strides = [1, 1]} : vector<16x32xf32> to vector<8x8xf32>
    %63 = vector.shape_cast %55 : vector<8x8xf32> to vector<1x8x8xf32>
    %64 = vector.shape_cast %56 : vector<8x8xf32> to vector<1x8x8xf32>
    %65 = vector.shape_cast %57 : vector<8x8xf32> to vector<1x8x8xf32>
    %66 = vector.shape_cast %58 : vector<8x8xf32> to vector<1x8x8xf32>
    %67 = vector.shape_cast %59 : vector<8x8xf32> to vector<1x8x8xf32>
    %68 = vector.shape_cast %60 : vector<8x8xf32> to vector<1x8x8xf32>
    %69 = vector.shape_cast %61 : vector<8x8xf32> to vector<1x8x8xf32>
    %70 = vector.shape_cast %62 : vector<8x8xf32> to vector<1x8x8xf32>
    %71 = tpu.concatenate %63, %64, %65, %66, %67, %68, %69, %70 in 0 : vector<1x8x8xf32>, vector<1x8x8xf32>, vector<1x8x8xf32>, vector<1x8x8xf32>, vector<1x8x8xf32>, vector<1x8x8xf32>, vector<1x8x8xf32>, vector<1x8x8xf32> -> vector<8x8x8xf32>
    %72 = arith.truncf %71 : vector<8x8x8xf32> to vector<8x8x8xbf16>
    %73 = vector.extract_strided_slice %36 {offsets = [0, 0], sizes = [8, 8], strides = [1, 1]} : vector<16x32xf32> to vector<8x8xf32>
    %74 = vector.extract_strided_slice %36 {offsets = [0, 8], sizes = [8, 8], strides = [1, 1]} : vector<16x32xf32> to vector<8x8xf32>
    %75 = vector.extract_strided_slice %36 {offsets = [0, 16], sizes = [8, 8], strides = [1, 1]} : vector<16x32xf32> to vector<8x8xf32>
    %76 = vector.extract_strided_slice %36 {offsets = [0, 24], sizes = [8, 8], strides = [1, 1]} : vector<16x32xf32> to vector<8x8xf32>
    %77 = vector.extract_strided_slice %36 {offsets = [8, 0], sizes = [8, 8], strides = [1, 1]} : vector<16x32xf32> to vector<8x8xf32>
    %78 = vector.extract_strided_slice %36 {offsets = [8, 8], sizes = [8, 8], strides = [1, 1]} : vector<16x32xf32> to vector<8x8xf32>
    %79 = vector.extract_strided_slice %36 {offsets = [8, 16], sizes = [8, 8], strides = [1, 1]} : vector<16x32xf32> to vector<8x8xf32>
    %80 = vector.extract_strided_slice %36 {offsets = [8, 24], sizes = [8, 8], strides = [1, 1]} : vector<16x32xf32> to vector<8x8xf32>
    %81 = vector.shape_cast %73 : vector<8x8xf32> to vector<1x8x8xf32>
    %82 = vector.shape_cast %74 : vector<8x8xf32> to vector<1x8x8xf32>
    %83 = vector.shape_cast %75 : vector<8x8xf32> to vector<1x8x8xf32>
    %84 = vector.shape_cast %76 : vector<8x8xf32> to vector<1x8x8xf32>
    %85 = vector.shape_cast %77 : vector<8x8xf32> to vector<1x8x8xf32>
    %86 = vector.shape_cast %78 : vector<8x8xf32> to vector<1x8x8xf32>
    %87 = vector.shape_cast %79 : vector<8x8xf32> to vector<1x8x8xf32>
    %88 = vector.shape_cast %80 : vector<8x8xf32> to vector<1x8x8xf32>
    %89 = tpu.concatenate %81, %82, %83, %84, %85, %86, %87, %88 in 0 : vector<1x8x8xf32>, vector<1x8x8xf32>, vector<1x8x8xf32>, vector<1x8x8xf32>, vector<1x8x8xf32>, vector<1x8x8xf32>, vector<1x8x8xf32>, vector<1x8x8xf32> -> vector<8x8x8xf32>
    %90 = arith.truncf %89 : vector<8x8x8xf32> to vector<8x8x8xbf16>
    "tpu.trace_start"() <{level = 10 : i32, message = "bqd,bkd->bqk"}> : () -> ()
    %cst_13 = arith.constant dense<0.000000e+00> : vector<8x8x8xf32>
    %91 = tpu.matmul %54, %72, %cst_13 {dimension_numbers = #tpu.dot_dimension_numbers<[2], [2], [1], [1], [0, 0, 0, 1, 1, 1], [0], [0]>} : vector<8x8x8xbf16>, vector<8x8x8xbf16>, vector<8x8x8xf32> -> vector<8x8x8xf32>
    "tpu.trace_stop"() : () -> ()
    %cst_14 = arith.constant dense<0xFF800000> : vector<8x8xf32>
    %92 = vector.multi_reduction <maximumf>, %91, %cst_14 [2] : vector<8x8x8xf32> to vector<8x8xf32>
    %93 = vector.shape_cast %92 : vector<8x8xf32> to vector<8x8x1xf32>
    %94 = vector.broadcast %93 : vector<8x8x1xf32> to vector<8x8x8xf32>
    %95 = arith.subf %91, %94 : vector<8x8x8xf32>
    %96 = math.exp %95 : vector<8x8x8xf32>
    %cst_15 = arith.constant dense<0.000000e+00> : vector<8x8xf32>
    %97 = vector.multi_reduction <add>, %96, %cst_15 [2] : vector<8x8x8xf32> to vector<8x8xf32>
    %98 = vector.shape_cast %97 : vector<8x8xf32> to vector<8x8x1xf32>
    %99 = tpu.reciprocal %98 {approx = true} : vector<8x8x1xf32> -> vector<8x8x1xf32>
    %100 = vector.broadcast %99 : vector<8x8x1xf32> to vector<8x8x8xf32>
    %101 = arith.mulf %96, %100 : vector<8x8x8xf32>
    %102 = arith.truncf %101 : vector<8x8x8xf32> to vector<8x8x8xbf16>
    "tpu.trace_start"() <{level = 10 : i32, message = "bqk,bkd->bqd"}> : () -> ()
    %cst_16 = arith.constant dense<0.000000e+00> : vector<8x8x8xf32>
    %103 = tpu.matmul %102, %90, %cst_16 {dimension_numbers = #tpu.dot_dimension_numbers<[2], [1], [1], [2], [0, 0, 0, 1, 1, 2], [0], [0]>} : vector<8x8x8xbf16>, vector<8x8x8xbf16>, vector<8x8x8xf32> -> vector<8x8x8xf32>
    "tpu.trace_stop"() : () -> ()
    %104 = vector.extract_strided_slice %103 {offsets = [0, 0, 0], sizes = [1, 8, 8], strides = [1, 1, 1]} : vector<8x8x8xf32> to vector<1x8x8xf32>
    %105 = vector.shape_cast %104 : vector<1x8x8xf32> to vector<8x8xf32>
    %106 = vector.extract_strided_slice %103 {offsets = [1, 0, 0], sizes = [1, 8, 8], strides = [1, 1, 1]} : vector<8x8x8xf32> to vector<1x8x8xf32>
    %107 = vector.shape_cast %106 : vector<1x8x8xf32> to vector<8x8xf32>
    %108 = vector.extract_strided_slice %103 {offsets = [2, 0, 0], sizes = [1, 8, 8], strides = [1, 1, 1]} : vector<8x8x8xf32> to vector<1x8x8xf32>
    %109 = vector.shape_cast %108 : vector<1x8x8xf32> to vector<8x8xf32>
    %110 = vector.extract_strided_slice %103 {offsets = [3, 0, 0], sizes = [1, 8, 8], strides = [1, 1, 1]} : vector<8x8x8xf32> to vector<1x8x8xf32>
    %111 = vector.shape_cast %110 : vector<1x8x8xf32> to vector<8x8xf32>
    %112 = tpu.concatenate %105, %107, %109, %111 in 1 : vector<8x8xf32>, vector<8x8xf32>, vector<8x8xf32>, vector<8x8xf32> -> vector<8x32xf32>
    %113 = vector.extract_strided_slice %103 {offsets = [4, 0, 0], sizes = [1, 8, 8], strides = [1, 1, 1]} : vector<8x8x8xf32> to vector<1x8x8xf32>
    %114 = vector.shape_cast %113 : vector<1x8x8xf32> to vector<8x8xf32>
    %115 = vector.extract_strided_slice %103 {offsets = [5, 0, 0], sizes = [1, 8, 8], strides = [1, 1, 1]} : vector<8x8x8xf32> to vector<1x8x8xf32>
    %116 = vector.shape_cast %115 : vector<1x8x8xf32> to vector<8x8xf32>
    %117 = vector.extract_strided_slice %103 {offsets = [6, 0, 0], sizes = [1, 8, 8], strides = [1, 1, 1]} : vector<8x8x8xf32> to vector<1x8x8xf32>
    %118 = vector.shape_cast %117 : vector<1x8x8xf32> to vector<8x8xf32>
    %119 = vector.extract_strided_slice %103 {offsets = [7, 0, 0], sizes = [1, 8, 8], strides = [1, 1, 1]} : vector<8x8x8xf32> to vector<1x8x8xf32>
    %120 = vector.shape_cast %119 : vector<1x8x8xf32> to vector<8x8xf32>
    %121 = tpu.concatenate %114, %116, %118, %120 in 1 : vector<8x8xf32>, vector<8x8xf32>, vector<8x8xf32>, vector<8x8xf32> -> vector<8x32xf32>
    %122 = tpu.concatenate %112, %121 in 0 : vector<8x32xf32>, vector<8x32xf32> -> vector<16x32xf32>
    %123 = arith.truncf %122 : vector<16x32xf32> to vector<16x32xbf16>
    %c0_17 = arith.constant 0 : index
    %c0_18 = arith.constant 0 : index
    %124 = vector.load %arg5[%c0_17, %c0_18] : memref<32x32xbf16, #tpu.memory_space<vmem>>, vector<32x32xbf16>
    %cst_19 = arith.constant dense<0.000000e+00> : vector<16x32xf32>
    %125 = tpu.matmul %123, %124, %cst_19 {dimension_numbers = #tpu.dot_dimension_numbers<[1], [0], [0], [1], [0, 0, 1, 1], [], []>} : vector<16x32xbf16>, vector<32x32xbf16>, vector<16x32xf32> -> vector<16x32xf32>
    %c0_20 = arith.constant 0 : index
    %c0_21 = arith.constant 0 : index
    %126 = vector.load %arg6[%c0_20, %c0_21] : memref<1x32xf32, #tpu.memory_space<vmem>>, vector<1x32xf32>
    %127 = vector.shape_cast %126 : vector<1x32xf32> to vector<32xf32>
    %128 = vector.shape_cast %127 : vector<32xf32> to vector<1x32xf32>
    %129 = vector.broadcast %128 : vector<1x32xf32> to vector<16x32xf32>
    %130 = arith.addf %125, %129 : vector<16x32xf32>
    %131 = arith.addf %0, %130 : vector<16x32xf32>
    %c0_22 = arith.constant 0 : index
    %c0_23 = arith.constant 0 : index
    %132 = vector.load %arg7[%c0_22, %c0_23] : memref<1x32xf32, #tpu.memory_space<vmem>>, vector<1x32xf32>
    %133 = vector.shape_cast %132 : vector<1x32xf32> to vector<32xf32>
    %c0_24 = arith.constant 0 : index
    %c0_25 = arith.constant 0 : index
    %134 = vector.load %arg8[%c0_24, %c0_25] : memref<1x32xf32, #tpu.memory_space<vmem>>, vector<1x32xf32>
    %135 = vector.shape_cast %134 : vector<1x32xf32> to vector<32xf32>
    %cst_26 = arith.constant dense<0.000000e+00> : vector<16xf32>
    %136 = vector.multi_reduction <add>, %131, %cst_26 [1] : vector<16x32xf32> to vector<16xf32>
    %137 = vector.shape_cast %136 : vector<16xf32> to vector<16x1xf32>
    %cst_27 = arith.constant 3.200000e+01 : f32
    %138 = vector.broadcast %cst_27 : f32 to vector<16x1xf32>
    %139 = arith.divf %137, %138 : vector<16x1xf32>
    %140 = vector.broadcast %139 : vector<16x1xf32> to vector<16x32xf32>
    %141 = arith.subf %131, %140 : vector<16x32xf32>
    %142 = arith.mulf %141, %141 : vector<16x32xf32>
    %cst_28 = arith.constant dense<0.000000e+00> : vector<16xf32>
    %143 = vector.multi_reduction <add>, %142, %cst_28 [1] : vector<16x32xf32> to vector<16xf32>
    %144 = vector.shape_cast %143 : vector<16xf32> to vector<16x1xf32>
    %cst_29 = arith.constant 3.200000e+01 : f32
    %145 = vector.broadcast %cst_29 : f32 to vector<16x1xf32>
    %146 = arith.divf %144, %145 : vector<16x1xf32>
    %147 = vector.broadcast %139 : vector<16x1xf32> to vector<16x32xf32>
    %148 = arith.subf %131, %147 : vector<16x32xf32>
    %cst_30 = arith.constant 9.99999974E-6 : f32
    %149 = vector.broadcast %cst_30 : f32 to vector<16x1xf32>
    %150 = arith.addf %146, %149 : vector<16x1xf32>
    %151 = math.rsqrt %150 : vector<16x1xf32>
    %152 = vector.broadcast %151 : vector<16x1xf32> to vector<16x32xf32>
    %153 = arith.mulf %148, %152 : vector<16x32xf32>
    %154 = vector.shape_cast %133 : vector<32xf32> to vector<1x32xf32>
    %155 = vector.broadcast %154 : vector<1x32xf32> to vector<16x32xf32>
    %156 = arith.mulf %153, %155 : vector<16x32xf32>
    %157 = vector.shape_cast %135 : vector<32xf32> to vector<1x32xf32>
    %158 = vector.broadcast %157 : vector<1x32xf32> to vector<16x32xf32>
    %159 = arith.addf %156, %158 : vector<16x32xf32>
    %160 = arith.truncf %159 : vector<16x32xf32> to vector<16x32xbf16>
    %c0_31 = arith.constant 0 : index
    %c0_32 = arith.constant 0 : index
    %161 = vector.load %arg9[%c0_31, %c0_32] : memref<32x128xbf16, #tpu.memory_space<vmem>>, vector<32x128xbf16>
    %cst_33 = arith.constant dense<0.000000e+00> : vector<16x128xf32>
    %162 = tpu.matmul %160, %161, %cst_33 {dimension_numbers = #tpu.dot_dimension_numbers<[1], [0], [0], [1], [0, 0, 1, 1], [], []>} : vector<16x32xbf16>, vector<32x128xbf16>, vector<16x128xf32> -> vector<16x128xf32>
    %c0_34 = arith.constant 0 : index
    %c0_35 = arith.constant 0 : index
    %163 = vector.load %arg10[%c0_34, %c0_35] : memref<1x128xf32, #tpu.memory_space<vmem>>, vector<1x128xf32>
    %164 = vector.shape_cast %163 : vector<1x128xf32> to vector<128xf32>
    %165 = vector.shape_cast %164 : vector<128xf32> to vector<1x128xf32>
    %166 = vector.broadcast %165 : vector<1x128xf32> to vector<16x128xf32>
    %167 = arith.addf %162, %166 : vector<16x128xf32>
    %cst_36 = arith.constant 5.000000e-01 : f32
    %168 = vector.broadcast %cst_36 : f32 to vector<16x128xf32>
    %169 = arith.mulf %168, %167 : vector<16x128xf32>
    %cst_37 = arith.constant 0.707106769 : f32
    %170 = vector.broadcast %cst_37 : f32 to vector<16x128xf32>
    %171 = arith.mulf %167, %170 : vector<16x128xf32>
    %172 = math.erf %171 : vector<16x128xf32>
    %cst_38 = arith.constant 1.000000e+00 : f32
    %173 = vector.broadcast %cst_38 : f32 to vector<16x128xf32>
    %174 = arith.addf %173, %172 : vector<16x128xf32>
    %175 = arith.mulf %169, %174 : vector<16x128xf32>
    %176 = arith.truncf %175 : vector<16x128xf32> to vector<16x128xbf16>
    %c0_39 = arith.constant 0 : index
    %c0_40 = arith.constant 0 : index
    %177 = vector.load %arg11[%c0_39, %c0_40] : memref<128x32xbf16, #tpu.memory_space<vmem>>, vector<128x32xbf16>
    %cst_41 = arith.constant dense<0.000000e+00> : vector<16x32xf32>
    %178 = tpu.matmul %176, %177, %cst_41 {dimension_numbers = #tpu.dot_dimension_numbers<[1], [0], [0], [1], [0, 0, 1, 1], [], []>} : vector<16x128xbf16>, vector<128x32xbf16>, vector<16x32xf32> -> vector<16x32xf32>
    %c0_42 = arith.constant 0 : index
    %c0_43 = arith.constant 0 : index
    %179 = vector.load %arg12[%c0_42, %c0_43] : memref<1x32xf32, #tpu.memory_space<vmem>>, vector<1x32xf32>
    %180 = vector.shape_cast %179 : vector<1x32xf32> to vector<32xf32>
    %181 = vector.shape_cast %180 : vector<32xf32> to vector<1x32xf32>
    %182 = vector.broadcast %181 : vector<1x32xf32> to vector<16x32xf32>
    %183 = arith.addf %178, %182 : vector<16x32xf32>
    %184 = arith.addf %131, %183 : vector<16x32xf32>
    %c0_44 = arith.constant 0 : index
    %c0_45 = arith.constant 0 : index
    %185 = vector.load %arg13[%c0_44, %c0_45] : memref<16x32xf32, #tpu.memory_space<vmem>>, vector<16x32xf32>
    tpu.vector_store %arg13[%c0_44, %c0_45], %184 {strides = array<i32>} : memref<16x32xf32, #tpu.memory_space<vmem>>, vector<16x32xf32>,
    return
  }
  func.func @transform_0(%arg0: i32) -> (i32, i32) {
    %c0_i32 = arith.constant 0 : i32
    %c0_i32_0 = arith.constant 0 : i32
    return %arg0, %c0_i32 : i32, i32
  }
  func.func @transform_1(%arg0: i32) -> (i32, i32) {
    %c0_i32 = arith.constant 0 : i32
    %c0_i32_0 = arith.constant 0 : i32
    %c0_i32_1 = arith.constant 0 : i32
    return %c0_i32, %c0_i32_0 : i32, i32
  }
  func.func @transform_2(%arg0: i32) -> (i32, i32) {
    %c0_i32 = arith.constant 0 : i32
    %c0_i32_0 = arith.constant 0 : i32
    %c0_i32_1 = arith.constant 0 : i32
    return %c0_i32, %c0_i32_0 : i32, i32
  }
  func.func @transform_3(%arg0: i32) -> (i32, i32) {
    %c0_i32 = arith.constant 0 : i32
    %c0_i32_0 = arith.constant 0 : i32
    %c0_i32_1 = arith.constant 0 : i32
    return %c0_i32, %c0_i32_0 : i32, i32
  }
  func.func @transform_4(%arg0: i32) -> (i32, i32) {
    %c0_i32 = arith.constant 0 : i32
    %c0_i32_0 = arith.constant 0 : i32
    %c0_i32_1 = arith.constant 0 : i32
    return %c0_i32, %c0_i32_0 : i32, i32
  }
  func.func @transform_5(%arg0: i32) -> (i32, i32) {
    %c0_i32 = arith.constant 0 : i32
    %c0_i32_0 = arith.constant 0 : i32
    %c0_i32_1 = arith.constant 0 : i32
    return %c0_i32, %c0_i32_0 : i32, i32
  }
  func.func @transform_6(%arg0: i32) -> (i32, i32) {
    %c0_i32 = arith.constant 0 : i32
    %c0_i32_0 = arith.constant 0 : i32
    %c0_i32_1 = arith.constant 0 : i32
    return %c0_i32, %c0_i32_0 : i32, i32
  }
  func.func @transform_7(%arg0: i32) -> (i32, i32) {
    %c0_i32 = arith.constant 0 : i32
    %c0_i32_0 = arith.constant 0 : i32
    %c0_i32_1 = arith.constant 0 : i32
    return %c0_i32, %c0_i32_0 : i32, i32
  }
  func.func @transform_8(%arg0: i32) -> (i32, i32) {
    %c0_i32 = arith.constant 0 : i32
    %c0_i32_0 = arith.constant 0 : i32
    %c0_i32_1 = arith.constant 0 : i32
    return %c0_i32, %c0_i32_0 : i32, i32
  }
  func.func @transform_9(%arg0: i32) -> (i32, i32) {
    %c0_i32 = arith.constant 0 : i32
    %c0_i32_0 = arith.constant 0 : i32
    %c0_i32_1 = arith.constant 0 : i32
    return %c0_i32, %c0_i32_0 : i32, i32
  }
  func.func @transform_10(%arg0: i32) -> (i32, i32) {
    %c0_i32 = arith.constant 0 : i32
    %c0_i32_0 = arith.constant 0 : i32
    %c0_i32_1 = arith.constant 0 : i32
    return %c0_i32, %c0_i32_0 : i32, i32
  }
  func.func @transform_11(%arg0: i32) -> (i32, i32) {
    %c0_i32 = arith.constant 0 : i32
    %c0_i32_0 = arith.constant 0 : i32
    %c0_i32_1 = arith.constant 0 : i32
    return %c0_i32, %c0_i32_0 : i32, i32
  }
  func.func @transform_12(%arg0: i32) -> (i32, i32) {
    %c0_i32 = arith.constant 0 : i32
    %c0_i32_0 = arith.constant 0 : i32
    return %arg0, %c0_i32 : i32, i32
  }
}

module attributes {stable_mosaic.version = 11 : i64} {
  func.func @block_kernel(%arg0: i32, %arg1: memref<16x32xf32, #tpu.memory_space<vmem>>, %arg2: memref<1x32xf32, #tpu.memory_space<vmem>>, %arg3: memref<1x32xf32, #tpu.memory_space<vmem>>, %arg4: memref<32x96xbf16, #tpu.memory_space<vmem>>, %arg5: memref<32x32xbf16, #tpu.memory_space<vmem>>, %arg6: memref<1x32xf32, #tpu.memory_space<vmem>>, %arg7: memref<1x32xf32, #tpu.memory_space<vmem>>, %arg8: memref<1x32xf32, #tpu.memory_space<vmem>>, %arg9: memref<32x128xbf16, #tpu.memory_space<vmem>>, %arg10: memref<1x128xf32, #tpu.memory_space<vmem>>, %arg11: memref<128x32xbf16, #tpu.memory_space<vmem>>, %arg12: memref<1x32xf32, #tpu.memory_space<vmem>>, %arg13: memref<16x32xf32, #tpu.memory_space<vmem>>) attributes {dimension_semantics = [#tpu.dimension_semantics<parallel>], iteration_bounds = array<i64: 1>, scalar_prefetch = 0 : i64, scratch_operands = 0 : i64, tpu.core_type = #tpu.core_type<tc>, window_params = [{transform_indices = @transform_0, window_bounds = array<i64: 16, 32>}, {pipeline_mode = #tpu.pipeline_mode<synchronous>, transform_indices = @transform_1, window_bounds = array<i64: 1, 32>}, {pipeline_mode = #tpu.pipeline_mode<synchronous>, transform_indices = @transform_2, window_bounds = array<i64: 1, 32>}, {pipeline_mode = #tpu.pipeline_mode<synchronous>, transform_indices = @transform_3, window_bounds = array<i64: 32, 96>}, {pipeline_mode = #tpu.pipeline_mode<synchronous>, transform_indices = @transform_4, window_bounds = array<i64: 32, 32>}, {pipeline_mode = #tpu.pipeline_mode<synchronous>, transform_indices = @transform_5, window_bounds = array<i64: 1, 32>}, {pipeline_mode = #tpu.pipeline_mode<synchronous>, transform_indices = @transform_6, window_bounds = array<i64: 1, 32>}, {pipeline_mode = #tpu.pipeline_mode<synchronous>, transform_indices = @transform_7, window_bounds = array<i64: 1, 32>}, {pipeline_mode = #tpu.pipeline_mode<synchronous>, transform_indices = @transform_8, window_bounds = array<i64: 32, 128>}, {pipeline_mode = #tpu.pipeline_mode<synchronous>, transform_indices = @transform_9, window_bounds = array<i64: 1, 128>}, {pipeline_mode = #tpu.pipeline_mode<synchronous>, transform_indices = @transform_10, window_bounds = array<i64: 128, 32>}, {pipeline_mode = #tpu.pipeline_mode<synchronous>, transform_indices = @transform_11, window_bounds = array<i64: 1, 32>}, {transform_indices = @transform_12, window_bounds = array<i64: 16, 32>}]} {
    %c0 = arith.constant 0 : index
    %c0_0 = arith.constant 0 : index
    %0 = vector.load %arg1[%c0, %c0_0] : memref<16x32xf32, #tpu.memory_space<vmem>>, vector<16x32xf32>
    %c0_1 = arith.constant 0 : index
    %c0_2 = arith.constant 0 : index
    %1 = vector.load %arg2[%c0_1, %c0_2] : memref<1x32xf32, #tpu.memory_space<vmem>>, vector<1x32xf32>
    %2 = vector.shape_cast %1 : vector<1x32xf32> to vector<32xf32>
    %c0_3 = arith.constant 0 : index
    %c0_4 = arith.constant 0 : index
    %3 = vector.load %arg3[%c0_3, %c0_4] : memref<1x32xf32, #tpu.memory_space<vmem>>, vector<1x32xf32>
    %4 = vector.shape_cast %3 : vector<1x32xf32> to vector<32xf32>
    %cst = arith.constant dense<0.000000e+00> : vector<16xf32>
    %5 = vector.multi_reduction <add>, %0, %cst [1] : vector<16x32xf32> to vector<16xf32>
    %6 = vector.shape_cast %5 : vector<16xf32> to vector<16x1xf32>
    %cst_5 = arith.constant 3.200000e+01 : f32
    %7 = vector.broadcast %cst_5 : f32 to vector<16x1xf32>
    %8 = arith.divf %6, %7 : vector<16x1xf32>
    %9 = vector.broadcast %8 : vector<16x1xf32> to vector<16x32xf32>
    %10 = arith.subf %0, %9 : vector<16x32xf32>
    %11 = arith.mulf %10, %10 : vector<16x32xf32>
    %cst_6 = arith.constant dense<0.000000e+00> : vector<16xf32>
    %12 = vector.multi_reduction <add>, %11, %cst_6 [1] : vector<16x32xf32> to vector<16xf32>
    %13 = vector.shape_cast %12 : vector<16xf32> to vector<16x1xf32>
    %cst_7 = arith.constant 3.200000e+01 : f32
    %14 = vector.broadcast %cst_7 : f32 to vector<16x1xf32>
    %15 = arith.divf %13, %14 : vector<16x1xf32>
    %16 = vector.broadcast %8 : vector<16x1xf32> to vector<16x32xf32>
    %17 = arith.subf %0, %16 : vector<16x32xf32>
    %cst_8 = arith.constant 9.99999974E-6 : f32
    %18 = vector.broadcast %cst_8 : f32 to vector<16x1xf32>
    %19 = arith.addf %15, %18 : vector<16x1xf32>
    %20 = math.rsqrt %19 : vector<16x1xf32>
    %21 = vector.broadcast %20 : vector<16x1xf32> to vector<16x32xf32>
    %22 = arith.mulf %17, %21 : vector<16x32xf32>
    %23 = vector.shape_cast %2 : vector<32xf32> to vector<1x32xf32>
    %24 = vector.broadcast %23 : vector<1x32xf32> to vector<16x32xf32>
    %25 = arith.mulf %22, %24 : vector<16x32xf32>
    %26 = vector.shape_cast %4 : vector<32xf32> to vector<1x32xf32>
    %27 = vector.broadcast %26 : vector<1x32xf32> to vector<16x32xf32>
    %28 = arith.addf %25, %27 : vector<16x32xf32>
    %29 = arith.truncf %28 : vector<16x32xf32> to vector<16x32xbf16>
    %c0_9 = arith.constant 0 : index
    %c0_10 = arith.constant 0 : index
    %30 = vector.load %arg4[%c0_9, %c0_10] : memref<32x96xbf16, #tpu.memory_space<vmem>>, vector<32x96xbf16>
    %cst_11 = arith.constant dense<0.000000e+00> : vector<16x96xf32>
    %31 = tpu.matmul %29, %30, %cst_11 {dimension_numbers = #tpu.dot_dimension_numbers<[1], [0], [0], [1], [0, 0, 1, 1], [], []>} : vector<16x32xbf16>, vector<32x96xbf16>, vector<16x96xf32> -> vector<16x96xf32>
    %32 = vector.extract_strided_slice %31 {offsets = [0, 0], sizes = [16, 32], strides = [1, 1]} : vector<16x96xf32> to vector<16x32xf32>
    %cst_12 = arith.constant 0.353553385 : f32
    %33 = vector.broadcast %cst_12 : f32 to vector<16x32xf32>
    %34 = arith.mulf %32, %33 : vector<16x32xf32>
    %35 = vector.extract_strided_slice %31 {offsets = [0, 32], sizes = [16, 32], strides = [1, 1]} : vector<16x96xf32> to vector<16x32xf32>
    %36 = vector.extract_strided_slice %31 {offsets = [0, 64], sizes = [16, 32], strides = [1, 1]} : vector<16x96xf32> to vector<16x32xf32>
    %37 = vector.extract_strided_slice %34 {offsets = [0, 0], sizes = [8, 8], strides = [1, 1]} : vector<16x32xf32> to vector<8x8xf32>
    %38 = vector.extract_strided_slice %34 {offsets = [0, 8], sizes = [8, 8], strides = [1, 1]} : vector<16x32xf32> to vector<8x8xf32>
    %39 = vector.extract_strided_slice %34 {offsets = [0, 16], sizes = [8, 8], strides = [1, 1]} : vector<16x32xf32> to vector<8x8xf32>
    %40 = vector.extract_strided_slice %34 {offsets = [0, 24], sizes = [8, 8], strides = [1, 1]} : vector<16x32xf32> to vector<8x8xf32>
    %41 = vector.extract_strided_slice %34 {offsets = [8, 0], sizes = [8, 8], strides = [1, 1]} : vector<16x32xf32> to vector<8x8xf32>
    %42 = vector.extract_strided_slice %34 {offsets = [8, 8], sizes = [8, 8], strides = [1, 1]} : vector<16x32xf32> to vector<8x8xf32>
    %43 = vector.extract_strided_slice %34 {offsets = [8, 16], sizes = [8, 8], strides = [1, 1]} : vector<16x32xf32> to vector<8x8xf32>
    %44 = vector.extract_strided_slice %34 {offsets = [8, 24], sizes = [8, 8], strides = [1, 1]} : vector<16x32xf32> to vector<8x8xf32>
    %45 = vector.shape_cast %37 : vector<8x8xf32> to vector<1x8x8xf32>
    %46 = vector.shape_cast %38 : vector<8x8xf32> to vector<1x8x8xf32>
    %47 = vector.shape_cast %39 : vector<8x8xf32> to vector<1x8x8xf32>
    %48 = vector.shape_cast %40 : vector<8x8xf32> to vector<1x8x8xf32>
    %49 = vector.shape_cast %41 : vector<8x8xf32> to vector<1x8x8xf32>
    %50 = vector.shape_cast %42 : vector<8x8xf32> to vector<1x8x8xf32>
    %51 = vector.shape_cast %43 : vector<8x8xf32> to vector<1x8x8xf32>
    %52 = vector.shape_cast %44 : vector<8x8xf32> to vector<1x8x8xf32>
    %53 = tpu.concatenate %45, %46, %47, %48, %49, %50, %51, %52 in 0 : vector<1x8x8xf32>, vector<1x8x8xf32>, vector<1x8x8xf32>, vector<1x8x8xf32>, vector<1x8x8xf32>, vector<1x8x8xf32>, vector<1x8x8xf32>, vector<1x8x8xf32> -> vector<8x8x8xf32>
    %54 = arith.truncf %53 : vector<8x8x8xf32> to vector<8x8x8xbf16>
    %55 = vector.extract_strided_slice %35 {offsets = [0, 0], sizes = [8, 8], strides = [1, 1]} : vector<16x32xf32> to vector<8x8xf32>
    %56 = vector.extract_strided_slice %35 {offsets = [0, 8], sizes = [8, 8], strides = [1, 1]} : vector<16x32xf32> to vector<8x8xf32>
    %57 = vector.extract_strided_slice %35 {offsets = [0, 16], sizes = [8, 8], strides = [1, 1]} : vector<16x32xf32> to vector<8x8xf32>
    %58 = vector.extract_strided_slice %35 {offsets = [0, 24], sizes = [8, 8], strides = [1, 1]} : vector<16x32xf32> to vector<8x8xf32>
    %59 = vector.extract_strided_slice %35 {offsets = [8, 0], sizes = [8, 8], strides = [1, 1]} : vector<16x32xf32> to vector<8x8xf32>
    %60 = vector.extract_strided_slice %35 {offsets = [8, 8], sizes = [8, 8], strides = [1, 1]} : vector<16x32xf32> to vector<8x8xf32>
    %61 = vector.extract_strided_slice %35 {offsets = [8, 16], sizes = [8, 8], strides = [1, 1]} : vector<16x32xf32> to vector<8x8xf32>
    %62 = vector.extract_strided_slice %35 {offsets = [8, 24], sizes = [8, 8], strides = [1, 1]} : vector<16x32xf32> to vector<8x8xf32>
    %63 = vector.shape_cast %55 : vector<8x8xf32> to vector<1x8x8xf32>
    %64 = vector.shape_cast %56 : vector<8x8xf32> to vector<1x8x8xf32>
    %65 = vector.shape_cast %57 : vector<8x8xf32> to vector<1x8x8xf32>
    %66 = vector.shape_cast %58 : vector<8x8xf32> to vector<1x8x8xf32>
    %67 = vector.shape_cast %59 : vector<8x8xf32> to vector<1x8x8xf32>
    %68 = vector.shape_cast %60 : vector<8x8xf32> to vector<1x8x8xf32>
    %69 = vector.shape_cast %61 : vector<8x8xf32> to vector<1x8x8xf32>
    %70 = vector.shape_cast %62 : vector<8x8xf32> to vector<1x8x8xf32>
    %71 = tpu.concatenate %63, %64, %65, %66, %67, %68, %69, %70 in 0 : vector<1x8x8xf32>, vector<1x8x8xf32>, vector<1x8x8xf32>, vector<1x8x8xf32>, vector<1x8x8xf32>, vector<1x8x8xf32>, vector<1x8x8xf32>, vector<1x8x8xf32> -> vector<8x8x8xf32>
    %72 = arith.truncf %71 : vector<8x8x8xf32> to vector<8x8x8xbf16>
    %73 = vector.extract_strided_slice %36 {offsets = [0, 0], sizes = [8, 8], strides = [1, 1]} : vector<16x32xf32> to vector<8x8xf32>
    %74 = vector.extract_strided_slice %36 {offsets = [0, 8], sizes = [8, 8], strides = [1, 1]} : vector<16x32xf32> to vector<8x8xf32>
    %75 = vector.extract_strided_slice %36 {offsets = [0, 16], sizes = [8, 8], strides = [1, 1]} : vector<16x32xf32> to vector<8x8xf32>
    %76 = vector.extract_strided_slice %36 {offsets = [0, 24], sizes = [8, 8], strides = [1, 1]} : vector<16x32xf32> to vector<8x8xf32>
    %77 = vector.extract_strided_slice %36 {offsets = [8, 0], sizes = [8, 8], strides = [1, 1]} : vector<16x32xf32> to vector<8x8xf32>
    %78 = vector.extract_strided_slice %36 {offsets = [8, 8], sizes = [8, 8], strides = [1, 1]} : vector<16x32xf32> to vector<8x8xf32>
    %79 = vector.extract_strided_slice %36 {offsets = [8, 16], sizes = [8, 8], strides = [1, 1]} : vector<16x32xf32> to vector<8x8xf32>
    %80 = vector.extract_strided_slice %36 {offsets = [8, 24], sizes = [8, 8], strides = [1, 1]} : vector<16x32xf32> to vector<8x8xf32>
    %81 = vector.shape_cast %73 : vector<8x8xf32> to vector<1x8x8xf32>
    %82 = vector.shape_cast %74 : vector<8x8xf32> to vector<1x8x8xf32>
    %83 = vector.shape_cast %75 : vector<8x8xf32> to vector<1x8x8xf32>
    %84 = vector.shape_cast %76 : vector<8x8xf32> to vector<1x8x8xf32>
    %85 = vector.shape_cast %77 : vector<8x8xf32> to vector<1x8x8xf32>
    %86 = vector.shape_cast %78 : vector<8x8xf32> to vector<1x8x8xf32>
    %87 = vector.shape_cast %79 : vector<8x8xf32> to vector<1x8x8xf32>
    %88 = vector.shape_cast %80 : vector<8x8xf32> to vector<1x8x8xf32>
    %89 = tpu.concatenate %81, %82, %83, %84, %85, %86, %87, %88 in 0 : vector<1x8x8xf32>, vector<1x8x8xf32>, vector<1x8x8xf32>, vector<1x8x8xf32>, vector<1x8x8xf32>, vector<1x8x8xf32>, vector<1x8x8xf32>, vector<1x8x8xf32> -> vector<8x8x8xf32>
    %90 = arith.truncf %89 : vector<8x8x8xf32> to vector<8x8x8xbf16>
    "tpu.trace_start"() <{level = 10 : i32, message = "bqd,bkd->bqk"}> : () -> ()
    %cst_13 = arith.constant dense<0.000000e+00> : vector<8x8x8xf32>
    %91 = tpu.matmul %54, %72, %cst_13 {dimension_numbers = #tpu.dot_dimension_numbers<[2], [2], [1], [1], [0, 0, 0, 1, 1, 1], [0], [0]>} : vector<8x8x8xbf16>, vector<8x8x8xbf16>, vector<8x8x8xf32> -> vector<8x8x8xf32>
    "tpu.trace_stop"() : () -> ()
    %cst_14 = arith.constant dense<0xFF800000> : vector<8x8xf32>
    %92 = vector.multi_reduction <maximumf>, %91, %cst_14 [2] : vector<8x8x8xf32> to vector<8x8xf32>
    %93 = vector.shape_cast %92 : vector<8x8xf32> to vector<8x8x1xf32>
    %94 = vector.broadcast %93 : vector<8x8x1xf32> to vector<8x8x8xf32>
    %95 = arith.subf %91, %94 : vector<8x8x8xf32>
    %96 = math.exp %95 : vector<8x8x8xf32>
    %cst_15 = arith.constant dense<0.000000e+00> : vector<8x8xf32>
    %97 = vector.multi_reduction <add>, %96, %cst_15 [2] : vector<8x8x8xf32> to vector<8x8xf32>
    %98 = vector.shape_cast %97 : vector<8x8xf32> to vector<8x8x1xf32>
    %99 = tpu.reciprocal %98 {approx = true} : vector<8x8x1xf32> -> vector<8x8x1xf32>
    %100 = vector.broadcast %99 : vector<8x8x1xf32> to vector<8x8x8xf32>
    %101 = arith.mulf %96, %100 : vector<8x8x8xf32>
    %102 = arith.truncf %101 : vector<8x8x8xf32> to vector<8x8x8xbf16>
    "tpu.trace_start"() <{level = 10 : i32, message = "bqk,bkd->bqd"}> : () -> ()
    %cst_16 = arith.constant dense<0.000000e+00> : vector<8x8x8xf32>
    %103 = tpu.matmul %102, %90, %cst_16 {dimension_numbers = #tpu.dot_dimension_numbers<[2], [1], [1], [2], [0, 0, 0, 1, 1, 2], [0], [0]>} : vector<8x8x8xbf16>, vector<8x8x8xbf16>, vector<8x8x8xf32> -> vector<8x8x8xf32>
    "tpu.trace_stop"() : () -> ()
    %104 = vector.extract_strided_slice %103 {offsets = [0, 0, 0], sizes = [1, 8, 8], strides = [1, 1, 1]} : vector<8x8x8xf32> to vector<1x8x8xf32>
    %105 = vector.shape_cast %104 : vector<1x8x8xf32> to vector<8x8xf32>
    %106 = vector.extract_strided_slice %103 {offsets = [1, 0, 0], sizes = [1, 8, 8], strides = [1, 1, 1]} : vector<8x8x8xf32> to vector<1x8x8xf32>
    %107 = vector.shape_cast %106 : vector<1x8x8xf32> to vector<8x8xf32>
    %108 = vector.extract_strided_slice %103 {offsets = [2, 0, 0], sizes = [1, 8, 8], strides = [1, 1, 1]} : vector<8x8x8xf32> to vector<1x8x8xf32>
    %109 = vector.shape_cast %108 : vector<1x8x8xf32> to vector<8x8xf32>
    %110 = vector.extract_strided_slice %103 {offsets = [3, 0, 0], sizes = [1, 8, 8], strides = [1, 1, 1]} : vector<8x8x8xf32> to vector<1x8x8xf32>
    %111 = vector.shape_cast %110 : vector<1x8x8xf32> to vector<8x8xf32>
    %112 = tpu.concatenate %105, %107, %109, %111 in 1 : vector<8x8xf32>, vector<8x8xf32>, vector<8x8xf32>, vector<8x8xf32> -> vector<8x32xf32>
    %113 = vector.extract_strided_slice %103 {offsets = [4, 0, 0], sizes = [1, 8, 8], strides = [1, 1, 1]} : vector<8x8x8xf32> to vector<1x8x8xf32>
    %114 = vector.shape_cast %113 : vector<1x8x8xf32> to vector<8x8xf32>
    %115 = vector.extract_strided_slice %103 {offsets = [5, 0, 0], sizes = [1, 8, 8], strides = [1, 1, 1]} : vector<8x8x8xf32> to vector<1x8x8xf32>
    %116 = vector.shape_cast %115 : vector<1x8x8xf32> to vector<8x8xf32>
    %117 = vector.extract_strided_slice %103 {offsets = [6, 0, 0], sizes = [1, 8, 8], strides = [1, 1, 1]} : vector<8x8x8xf32> to vector<1x8x8xf32>
    %118 = vector.shape_cast %117 : vector<1x8x8xf32> to vector<8x8xf32>
    %119 = vector.extract_strided_slice %103 {offsets = [7, 0, 0], sizes = [1, 8, 8], strides = [1, 1, 1]} : vector<8x8x8xf32> to vector<1x8x8xf32>
    %120 = vector.shape_cast %119 : vector<1x8x8xf32> to vector<8x8xf32>
    %121 = tpu.concatenate %114, %116, %118, %120 in 1 : vector<8x8xf32>, vector<8x8xf32>, vector<8x8xf32>, vector<8x8xf32> -> vector<8x32xf32>
    %122 = tpu.concatenate %112, %121 in 0 : vector<8x32xf32>, vector<8x32xf32> -> vector<16x32xf32>
    %123 = arith.truncf %122 : vector<16x32xf32> to vector<16x32xbf16>
    %c0_17 = arith.constant 0 : index
    %c0_18 = arith.constant 0 : index
    %124 = vector.load %arg5[%c0_17, %c0_18] : memref<32x32xbf16, #tpu.memory_space<vmem>>, vector<32x32xbf16>
    %cst_19 = arith.constant dense<0.000000e+00> : vector<16x32xf32>
    %125 = tpu.matmul %123, %124, %cst_19 {dimension_numbers = #tpu.dot_dimension_numbers<[1], [0], [0], [1], [0, 0, 1, 1], [], []>} : vector<16x32xbf16>, vector<32x32xbf16>, vector<16x32xf32> -> vector<16x32xf32>
    %c0_20 = arith.constant 0 : index
    %c0_21 = arith.constant 0 : index
    %126 = vector.load %arg6[%c0_20, %c0_21] : memref<1x32xf32, #tpu.memory_space<vmem>>, vector<1x32xf32>
    %127 = vector.shape_cast %126 : vector<1x32xf32> to vector<32xf32>
    %128 = vector.shape_cast %127 : vector<32xf32> to vector<1x32xf32>
    %129 = vector.broadcast %128 : vector<1x32xf32> to vector<16x32xf32>
    %130 = arith.addf %125, %129 : vector<16x32xf32>
    %131 = arith.addf %0, %130 : vector<16x32xf32>
    %c0_22 = arith.constant 0 : index
    %c0_23 = arith.constant 0 : index
    %132 = vector.load %arg7[%c0_22, %c0_23] : memref<1x32xf32, #tpu.memory_space<vmem>>, vector<1x32xf32>
    %133 = vector.shape_cast %132 : vector<1x32xf32> to vector<32xf32>
    %c0_24 = arith.constant 0 : index
    %c0_25 = arith.constant 0 : index
    %134 = vector.load %arg8[%c0_24, %c0_25] : memref<1x32xf32, #tpu.memory_space<vmem>>, vector<1x32xf32>
    %135 = vector.shape_cast %134 : vector<1x32xf32> to vector<32xf32>
    %cst_26 = arith.constant dense<0.000000e+00> : vector<16xf32>
    %136 = vector.multi_reduction <add>, %131, %cst_26 [1] : vector<16x32xf32> to vector<16xf32>
    %137 = vector.shape_cast %136 : vector<16xf32> to vector<16x1xf32>
    %cst_27 = arith.constant 3.200000e+01 : f32
    %138 = vector.broadcast %cst_27 : f32 to vector<16x1xf32>
    %139 = arith.divf %137, %138 : vector<16x1xf32>
    %140 = vector.broadcast %139 : vector<16x1xf32> to vector<16x32xf32>
    %141 = arith.subf %131, %140 : vector<16x32xf32>
    %142 = arith.mulf %141, %141 : vector<16x32xf32>
    %cst_28 = arith.constant dense<0.000000e+00> : vector<16xf32>
    %143 = vector.multi_reduction <add>, %142, %cst_28 [1] : vector<16x32xf32> to vector<16xf32>
    %144 = vector.shape_cast %143 : vector<16xf32> to vector<16x1xf32>
    %cst_29 = arith.constant 3.200000e+01 : f32
    %145 = vector.broadcast %cst_29 : f32 to vector<16x1xf32>
    %146 = arith.divf %144, %145 : vector<16x1xf32>
    %147 = vector.broadcast %139 : vector<16x1xf32> to vector<16x32xf32>
    %148 = arith.subf %131, %147 : vector<16x32xf32>
    %cst_30 = arith.constant 9.99999974E-6 : f32
    %149 = vector.broadcast %cst_30 : f32 to vector<16x1xf32>
    %150 = arith.addf %146, %149 : vector<16x1xf32>
    %151 = math.rsqrt %150 : vector<16x1xf32>
    %152 = vector.broadcast %151 : vector<16x1xf32> to vector<16x32xf32>
    %153 = arith.mulf %148, %152 : vector<16x32xf32>
    %154 = vector.shape_cast %133 : vector<32xf32> to vector<1x32xf32>
    %155 = vector.broadcast %154 : vector<1x32xf32> to vector<16x32xf32>
    %156 = arith.mulf %153, %155 : vector<16x32xf32>
    %157 = vector.shape_cast %135 : vector<32xf32> to vector<1x32xf32>
    %158 = vector.broadcast %157 : vector<1x32xf32> to vector<16x32xf32>
    %159 = arith.addf %156, %158 : vector<16x32xf32>
    %160 = arith.truncf %159 : vector<16x32xf32> to vector<16x32xbf16>
    %c0_31 = arith.constant 0 : index
    %c0_32 = arith.constant 0 : index
    %161 = vector.load %arg9[%c0_31, %c0_32] : memref<32x128xbf16, #tpu.memory_space<vmem>>, vector<32x128xbf16>
    %cst_33 = arith.constant dense<0.000000e+00> : vector<16x128xf32>
    %162 = tpu.matmul %160, %161, %cst_33 {dimension_numbers = #tpu.dot_dimension_numbers<[1], [0], [0], [1], [0, 0, 1, 1], [], []>} : vector<16x32xbf16>, vector<32x128xbf16>, vector<16x128xf32> -> vector<16x128xf32>
    %c0_34 = arith.constant 0 : index
    %c0_35 = arith.constant 0 : index
    %163 = vector.load %arg10[%c0_34, %c0_35] : memref<1x128xf32, #tpu.memory_space<vmem>>, vector<1x128xf32>
    %164 = vector.shape_cast %163 : vector<1x128xf32> to vector<128xf32>
    %165 = vector.shape_cast %164 : vector<128xf32> to vector<1x128xf32>
    %166 = vector.broadcast %165 : vector<1x128xf32> to vector<16x128xf32>
    %167 = arith.addf %162, %166 : vector<16x128xf32>
    %cst_36 = arith.constant 5.000000e-01 : f32
    %168 = vector.broadcast %cst_36 : f32 to vector<16x128xf32>
    %169 = arith.mulf %168, %167 : vector<16x128xf32>
    %cst_37 = arith.constant 0.707106769 : f32
    %170 = vector.broadcast %cst_37 : f32 to vector<16x128xf32>
    %171 = arith.mulf %167, %170 : vector<16x128xf32>
    %172 = math.erf %171 : vector<16x128xf32>
    %cst_38 = arith.constant 1.000000e+00 : f32
    %173 = vector.broadcast %cst_38 : f32 to vector<16x128xf32>
    %174 = arith.addf %173, %172 : vector<16x128xf32>
    %175 = arith.mulf %169, %174 : vector<16x128xf32>
    %176 = arith.truncf %175 : vector<16x128xf32> to vector<16x128xbf16>
    %c0_39 = arith.constant 0 : index
    %c0_40 = arith.constant 0 : index
    %177 = vector.load %arg11[%c0_39, %c0_40] : memref<128x32xbf16, #tpu.memory_space<vmem>>, vector<128x32xbf16>
    %cst_41 = arith.constant dense<0.000000e+00> : vector<16x32xf32>
    %178 = tpu.matmul %176, %177, %cst_41 {dimension_numbers = #tpu.dot_dimension_numbers<[1], [0], [0], [1], [0, 0, 1, 1], [], []>} : vector<16x128xbf16>, vector<128x32xbf16>, vector<16x32xf32> -> vector<16x32xf32>
    %c0_42 = arith.constant 0 : index
    %c0_43 = arith.constant 0 : index
    %179 = vector.load %arg12[%c0_42, %c0_43] : memref<1x32xf32, #tpu.memory_space<vmem>>, vector<1x32xf32>
    %180 = vector.shape_cast %179 : vector<1x32xf32> to vector<32xf32>
    %181 = vector.shape_cast %180 : vector<32xf32> to vector<1x32xf32>
    %182 = vector.broadcast %181 : vector<1x32xf32> to vector<16x32xf32>
    %183 = arith.addf %178, %182 : vector<16x32xf32>
    %184 = arith.addf %131, %183 : vector<16x32xf32>
    %c0_44 = arith.constant 0 : index
    %c0_45 = arith.constant 0 : index
    %185 = vector.load %arg13[%c0_44, %c0_45] : memref<16x32xf32, #tpu.memory_space<vmem>>, vector<16x32xf32>
    tpu.vector_store %arg13[%c0_44, %c0_45], %184 {strides = array<i32>} : memref<16x32xf32, #tpu.memory_space<vmem>>, vector<16x32xf32>,
    return
  }
  func.func @transform_0(%arg0: i32) -> (i32, i32) {
    %c0_i32 = arith.constant 0 : i32
    %c0_i32_0 = arith.constant 0 : i32
    return %arg0, %c0_i32 : i32, i32
  }
  func.func @transform_1(%arg0: i32) -> (i32, i32) {
    %c0_i32 = arith.constant 0 : i32
    %c0_i32_0 = arith.constant 0 : i32
    %c0_i32_1 = arith.constant 0 : i32
    return %c0_i32, %c0_i32_0 : i32, i32
  }
  func.func @transform_2(%arg0: i32) -> (i32, i32) {
    %c0_i32 = arith.constant 0 : i32
    %c0_i32_0 = arith.constant 0 : i32
    %c0_i32_1 = arith.constant 0 : i32
    return %c0_i32, %c0_i32_0 : i32, i32
  }
  func.func @transform_3(%arg0: i32) -> (i32, i32) {
    %c0_i32 = arith.constant 0 : i32
    %c0_i32_0 = arith.constant 0 : i32
    %c0_i32_1 = arith.constant 0 : i32
    return %c0_i32, %c0_i32_0 : i32, i32
  }
  func.func @transform_4(%arg0: i32) -> (i32, i32) {
    %c0_i32 = arith.constant 0 : i32
    %c0_i32_0 = arith.constant 0 : i32
    %c0_i32_1 = arith.constant 0 : i32
    return %c0_i32, %c0_i32_0 : i32, i32
  }
  func.func @transform_5(%arg0: i32) -> (i32, i32) {
    %c0_i32 = arith.constant 0 : i32
    %c0_i32_0 = arith.constant 0 : i32
    %c0_i32_1 = arith.constant 0 : i32
    return %c0_i32, %c0_i32_0 : i32, i32
  }
  func.func @transform_6(%arg0: i32) -> (i32, i32) {
    %c0_i32 = arith.constant 0 : i32
    %c0_i32_0 = arith.constant 0 : i32
    %c0_i32_1 = arith.constant 0 : i32
    return %c0_i32, %c0_i32_0 : i32, i32
  }
  func.func @transform_7(%arg0: i32) -> (i32, i32) {
    %c0_i32 = arith.constant 0 : i32
    %c0_i32_0 = arith.constant 0 : i32
    %c0_i32_1 = arith.constant 0 : i32
    return %c0_i32, %c0_i32_0 : i32, i32
  }
  func.func @transform_8(%arg0: i32) -> (i32, i32) {
    %c0_i32 = arith.constant 0 : i32
    %c0_i32_0 = arith.constant 0 : i32
    %c0_i32_1 = arith.constant 0 : i32
    return %c0_i32, %c0_i32_0 : i32, i32
  }
  func.func @transform_9(%arg0: i32) -> (i32, i32) {
    %c0_i32 = arith.constant 0 : i32
    %c0_i32_0 = arith.constant 0 : i32
    %c0_i32_1 = arith.constant 0 : i32
    return %c0_i32, %c0_i32_0 : i32, i32
  }
  func.func @transform_10(%arg0: i32) -> (i32, i32) {
    %c0_i32 = arith.constant 0 : i32
    %c0_i32_0 = arith.constant 0 : i32
    %c0_i32_1 = arith.constant 0 : i32
    return %c0_i32, %c0_i32_0 : i32, i32
  }
  func.func @transform_11(%arg0: i32) -> (i32, i32) {
    %c0_i32 = arith.constant 0 : i32
    %c0_i32_0 = arith.constant 0 : i32
    %c0_i32_1 = arith.constant 0 : i32
    return %c0_i32, %c0_i32_0 : i32, i32
  }
  func.func @transform_12(%arg0: i32) -> (i32, i32) {
    %c0_i32 = arith.constant 0 : i32
    %c0_i32_0 = arith.constant 0 : i32
    return %arg0, %c0_i32 : i32, i32
  }
}

</mosaic_0001>

<bundles_post_ra>
// kernel: tpu_custom_call.1
= control target key start
LH: loop header
LB: loop body
LE: loop exit
PB: predicated region body
PF: predicated region fallthrough
CT: control target
= control target key end

     0   :  { %vm47_vm0 = vcmask 261120   ;;  %s1581_s0 = inlined_call_operand.vmem [shape: f32[16,32], index: 0, kind: input, shape index: {}]   ;;  %s1582_s1 = inlined_call_operand.vmem [shape: f32[1,32], index: 1, kind: input, shape index: {}]   ;;  %s1583_s2 = inlined_call_operand.vmem [shape: f32[1,32], index: 2, kind: input, shape index: {}]   ;;  %s1584_s3 = inlined_call_operand.vmem [shape: bf16[32,96], index: 3, kind: input, shape index: {}]   ;;  %s1585_s4 = inlined_call_operand.vmem [shape: bf16[32,32], index: 4, kind: input, shape index: {}]   ;;  %s1586_s5 = inlined_call_operand.vmem [shape: f32[1,32], index: 5, kind: input, shape index: {}]   ;;  %s1587_s6 = inlined_call_operand.vmem [shape: f32[1,32], index: 6, kind: input, shape index: {}]   ;;  %s1588_s7 = inlined_call_operand.vmem [shape: f32[1,32], index: 7, kind: input, shape index: {}]   ;;  %s1589_s8 = inlined_call_operand.vmem [shape: bf16[32,128], index: 8, kind: input, shape index: {}]   ;;  %s1590_s9 = inlined_call_operand.vmem [shape: f32[1,128], index: 9, kind: input, shape index: {}]   ;;  %s1591_s10 = inlined_call_operand.vmem [shape: bf16[128,32], index: 10, kind: input, shape index: {}]   ;;  %s1592_s11 = inlined_call_operand.vmem [shape: f32[1,32], index: 11, kind: input, shape index: {}]   ;;  %s1593_s12 = inlined_call_operand.hbm [shape: f32[16,32], index: 12, kind: output, shape index: {}]  }
   0x1   :  { %v1293_v0 = vld [vmem:[%s1581_s0] sm:$0xff] }
   0x2   :  { %v48_v1 = vsel %vm47_vm0, %v1293_v0, 0.0 }
   0x3   :  { %49 = vadd.xlane.f32.xlu0 %v48_v1 }
   0x4   :  { %17 = vsyncpa [#allocation3], 0  ;;  %v1300_v2 = vld [vmem:[%s1581_s0 + $0x8] sm:$0xff]  ;;  %v1214_v4 = vmov 32.0   ;;  %v1095_v23 = vld [vmem:[%s1584_s3] sm:$0xff]  ;;  %s1215_s13 = smov 104  }
   0x5   :  { %v51_v3 = vsel %vm47_vm0, %v1300_v2, 0.0  ;;  %1142 = vrcp.f32 %v1214_v4  ;;  %v1096_v21 = vld [vmem:[%s1584_s3 + $0x8] sm:$0xff]  ;;  %v1135_v42 = vld [vmem:[%s1582_s1] ss:$0 sm:$0xff]  ;;  %s1216_s1 = smov 120   ;;  %s1217_s14 = smov 112  }
   0x6   :  { %135 = vmatpush.bf16.msra.mxu0 %v1096_v21  ;;  %v1136_v47 = vld [vmem:[%s1583_s2] ss:$0 sm:$0xff]  ;;  %s1218_s2 = smov 96   ;;  %vm206_vm8 = vcmask 64512   ;;  %s1219_s15 = smov 64   ;;  %vm495_vm9 = vcmask 1043456  }
   0x7   :  { %s1220_s16 = smov 8   ;;  %s1221_s17 = smov 24   ;;  %vm672_vm10 = vcmask 130048   ;;  %vm674_vm11 = vcmask 195584  }
   0x8   :  { %s1222_s18 = smov 16  }
   0xa   :  { %136 = vmatpush.bf16.msra.mxu0 %v1095_v23 }
   0xb   :  { %52 = vadd.xlane.f32.xlu0 %v51_v3  ;;  %v1143_v5 = vpop.eup %1142 }
   0xc   :  { %v55_v6 = vmul.f32 32.0, %v1143_v5  ;;  %vm59_vm1 = vweird.f32 %v1143_v5 }
   0xe   :  { %v56_v7 = vsub.f32 1.0, %v55_v6 }
  0x10   :  { %v57_v8 = vmul.f32 %v1143_v5, %v56_v7 }
  0x12   :  { %v58_v9 = vadd.f32 %v1143_v5, %v57_v8 }
  0x14   :  { %v1304_v10 = vsel %vm59_vm1, %v1143_v5, %v58_v9 }
  0x76   :  { %v50_v11 = vpop.xlane.xlu0 %49 }
  0x77   :  { %v61_v12 = vmul.f32 %v1304_v10, %v50_v11 }
  0x79   :  { %v63_v13 = vsub.f32 %v1293_v0, %v61_v12 }
  0x7b   :  { %v65_v14 = vmul.f32 %v63_v13, %v63_v13 }
  0x7d   :  { %v67_v15 = vsel %vm47_vm0, %v65_v14, 0.0 }
  0x7e   :  { %68 = vadd.xlane.f32.xlu1 %v67_v15  ;;  %v53_v16 = vpop.xlane.xlu0 %52 }
  0x7f   :  { %v62_v17 = vmul.f32 %v1304_v10, %v53_v16 }
  0x81   :  { %v64_v18 = vsub.f32 %v1300_v2, %v62_v17 }
  0x83   :  { %v66_v19 = vmul.f32 %v64_v18, %v64_v18 }
  0x85   :  { %v70_v20 = vsel %vm47_vm0, %v66_v19, 0.0 }
  0x86   :  { %71 = vadd.xlane.f32.xlu1 %v70_v20 }
  0xf1   :  { %v69_v22 = vpop.xlane.xlu1 %68 }
  0xf2   :  { %v73_v24 = vmul.f32 %v69_v22, %v1304_v10 }
  0xf4   :  { %v75_v25 = vadd.f32 1e-05, %v73_v24 }
  0xf6   :  { %1144 = vrsqrt.f32 %v75_v25  ;;  %vm83_vm3 = vweird.f32 %v75_v25 }
  0xf9   :  { %v72_v26 = vpop.xlane.xlu1 %71 }
  0xfa   :  { %v74_v27 = vmul.f32 %v72_v26, %v1304_v10 }
  0xfc   :  { %v1145_v28 = vpop.eup %1144  ;;  %v76_v29 = vadd.f32 1e-05, %v74_v27 }
  0xfd   :  { %v78_v30 = vmul.f32 %v1145_v28, %v75_v25  ;;  %vm84_vm2 = vweird.f32 %v1145_v28 }
  0xfe   :  { %1146 = vrsqrt.f32 %v76_v29  ;;  %vm85_vm4 = vmor %vm83_vm3, %vm84_vm2  ;;  %vm93_vm6 = vweird.f32 %v76_v29 }
  0xff   :  { %v79_v31 = vmul.f32 %v1145_v28, %v78_v30 }
 0x101   :  { %v80_v32 = vmul.f32 0.5, %v79_v31 }
 0x103   :  { %v81_v33 = vsub.f32 1.5, %v80_v32 }
 0x104   :  { %v1147_v34 = vpop.eup %1146 }
 0x105   :  { %v82_v35 = vmul.f32 %v1145_v28, %v81_v33  ;;  %v88_v36 = vmul.f32 %v1147_v34, %v76_v29  ;;  %vm94_vm5 = vweird.f32 %v1147_v34 }
 0x106   :  { %vm95_vm7 = vmor %vm93_vm6, %vm94_vm5 }
 0x107   :  { %v89_v37 = vmul.f32 %v1147_v34, %v88_v36  ;;  %v86_v38 = vsel %vm85_vm4, %v1145_v28, %v82_v35 }
 0x108   :  { %v97_v41 = vmul.f32 %v86_v38, %v63_v13 }
 0x109   :  { %v90_v39 = vmul.f32 0.5, %v89_v37 }
 0x10a   :  { %v102_v46 = vmul.f32 %v1135_v42, %v97_v41 }
 0x10b   :  { %v91_v40 = vsub.f32 1.5, %v90_v39 }
 0x10c   :  { %v107_v49 = vadd.f32 %v1136_v47, %v102_v46 }
 0x10d   :  { %v92_v43 = vmul.f32 %v1147_v34, %v91_v40 }
 0x10f   :  { %v96_v44 = vsel %vm95_vm7, %v1147_v34, %v92_v43 }
 0x110   :  { %v98_v45 = vmul.f32 %v96_v44, %v64_v18 }
 0x112   :  { %v103_v48 = vmul.f32 %v1135_v42, %v98_v45 }
 0x114   :  { %v108_v50 = vadd.f32 %v1136_v47, %v103_v48 }
 0x116   :  { %v109_v51 = vpack.c.bf16 %v108_v50, %v107_v49 }
 0x118   :  { %1026 = vmatmul.msk.bf16.vlgmr.msra.gmra.mxu0 %vm47_vm0, %v109_v51 }
 0x195   :  { %v138_v52 = vpop.f32.mrf.mxu0 }
 0x196   :  { %180 = vrot.lane.b32.xlu0 %v138_v52, %s1215_s13  ;;  %174 = vrot.lane.b32.xlu2 %v138_v52, %s1216_s1  ;;  %v1331_v54 = vmul.f32 0.35355338, %v138_v52  ;;  %v193_v11 = vpack.c.bf16 %v138_v52, %v138_v52 }
 0x198   :  { %v202_v15 = vunpack.c.l.b16 %v193_v11  ;;  %v165_v48 = vpack.c.bf16 %v1331_v54, %v1331_v54 }
 0x19a   :  { %v1361_v19 = vpack.c.b16 %v202_v15, %v202_v15 }
 0x19d   :  { %v140_v53 = vpop.f32.mrf.mxu0 }
 0x19e   :  { %177 = vrot.lane.b32.xlu2 %v138_v52, %s1217_s14  ;;  %184 = vrot.lane.b32.xlu1 %v140_v53, %s1216_s1  ;;  %v1353_v9 = vmul.f32 0.35355338, %v140_v53  ;;  %v197_v22 = vpack.c.bf16 %v140_v53, %v140_v53 }
 0x1a0   :  { %v299_v23 = vunpack.c.l.b16 %v197_v22 }
 0x1a2   :  { %v1375_v24 = vpack.c.b16 %v299_v23, %v299_v23 }
 0x1a6   :  { %187 = vrot.lane.b32.xlu2 %v140_v53, %s1217_s14  ;;  %149 = vrot.lane.b32.xlu1 %v1331_v54, %s1217_s14 }
 0x1ae   :  { %190 = vrot.lane.b32.xlu2 %v140_v53, %s1215_s13 }
 0x1f0   :  { %v175_v55 = vpop.permute.xlu2 %174 }
 0x1f1   :  { %v194_v56 = vpack.c.bf16 %v175_v55, %v175_v55  ;;  %v169_v55 = vpack.c.bf16 %v1353_v9, %v1353_v9 }
 0x1f3   :  { %v227_v57 = vunpack.c.l.b16 %v194_v56 }
 0x1f5   :  { %v1337_v58 = vpack.c.b16 %v227_v57, %v227_v57 }
 0x1f7   :  { %229 = vrot.lane.b32.xlu2 %v1337_v58, %s1218_s2 }
 0x1f8   :  { %v178_v59 = vpop.permute.xlu2 %177 }
 0x1f9   :  { %v195_v60 = vpack.c.bf16 %v178_v59, %v178_v59 }
 0x1fb   :  { %v251_v61 = vunpack.c.l.b16 %v195_v60 }
 0x1fd   :  { %v1341_v62 = vpack.c.b16 %v251_v61, %v251_v61 }
 0x1ff   :  { %253 = vrot.lane.b32.xlu0 %v1341_v62, %s1218_s2  ;;  %146 = vrot.lane.b32.xlu2 %v1331_v54, %s1216_s1 }
 0x200   :  { %v188_v63 = vpop.permute.xlu2 %187 }
 0x201   :  { %v199_v1 = vpack.c.bf16 %v188_v63, %v188_v63 }
 0x203   :  { %v347_v3 = vunpack.c.l.b16 %v199_v1 }
 0x205   :  { %v1347_v4 = vpack.c.b16 %v347_v3, %v347_v3 }
 0x207   :  { %349 = vrot.lane.b32.xlu1 %v1347_v4, %s1218_s2 }
 0x208   :  { %v181_v5 = vpop.permute.xlu0 %180  ;;  %v191_v14 = vpop.permute.xlu2 %190 }
 0x209   :  { %v196_v6 = vpack.c.bf16 %v181_v5, %v181_v5  ;;  %v200_v17 = vpack.c.bf16 %v191_v14, %v191_v14 }
 0x20b   :  { %v275_v7 = vunpack.c.l.b16 %v196_v6  ;;  %v371_v20 = vunpack.c.l.b16 %v200_v17 }
 0x20d   :  { %v1351_v8 = vpack.c.b16 %v275_v7, %v275_v7  ;;  %v1369_v21 = vpack.c.b16 %v371_v20, %v371_v20 }
 0x20f   :  { %277 = vrot.lane.b32.xlu0 %v1351_v8, %s1218_s2  ;;  %159 = vrot.lane.b32.xlu1 %v1353_v9, %s1217_s14 }
 0x210   :  { %v185_v12 = vpop.permute.xlu1 %184 }
 0x211   :  { %v198_v13 = vpack.c.bf16 %v185_v12, %v185_v12 }
 0x213   :  { %v323_v16 = vunpack.c.l.b16 %v198_v13 }
 0x215   :  { %v1359_v18 = vpack.c.b16 %v323_v16, %v323_v16 }
 0x217   :  { %152 = vrot.lane.b32.xlu0 %v1331_v54, %s1215_s13  ;;  %325 = vrot.lane.b32.xlu2 %v1359_v18, %s1218_s2 }
 0x218   :  { %204 = vrot.lane.b32.xlu1 %v1361_v19, %s1218_s2  ;;  %v150_v29 = vpop.permute.xlu1 %149 }
 0x219   :  { %v167_v34 = vpack.c.bf16 %v150_v29, %v150_v29 }
 0x21f   :  { %373 = vrot.lane.b32.xlu0 %v1369_v21, %s1218_s2  ;;  %156 = vrot.lane.b32.xlu2 %v1353_v9, %s1216_s1 }
 0x227   :  { %301 = vrot.lane.b32.xlu0 %v1375_v24, %s1218_s2  ;;  %162 = vrot.lane.b32.xlu2 %v1353_v9, %s1215_s13 }
 0x251   :  { %v230_v25 = vpop.permute.xlu2 %229 }
 0x252   :  { %v235_v26 = vsel %vm206_vm8, %v230_v25, 0 }
 0x253   :  { %244 = vmatpush.bf16.xpose.msra.mxu2 %v235_v26 }
 0x259   :  { %v147_v27 = vpop.permute.xlu2 %146 }
 0x25a   :  { %v166_v28 = vpack.c.bf16 %v147_v27, %v147_v27 }
 0x25c   :  { %1028 = vmatmul.msk.bf16.vlgmr.msra.gmra.mxu2 %vm206_vm8, %v166_v28 }
 0x271   :  { %v254_v30 = vpop.permute.xlu0 %253  ;;  %v326_v31 = vpop.permute.xlu2 %325 }
 0x272   :  { %v259_v32 = vsel %vm206_vm8, %v254_v30, 0  ;;  %v331_v33 = vsel %vm206_vm8, %v326_v31, 0 }
 0x273   :  { %268 = vmatpush.bf16.xpose.msra.mxu3 %v259_v32  ;;  %340 = vmatpush.bf16.xpose.msrb.mxu2 %v331_v33 }
 0x279   :  { %v350_v35 = vpop.permute.xlu1 %349  ;;  %v157_v36 = vpop.permute.xlu2 %156 }
 0x27a   :  { %v170_v37 = vpack.c.bf16 %v157_v36, %v157_v36  ;;  %1029 = vmatmul.msk.bf16.vlgmr.msra.gmra.mxu3 %vm206_vm8, %v167_v34  ;;  %v355_v38 = vsel %vm206_vm8, %v350_v35, 0 }
 0x27b   :  { %364 = vmatpush.bf16.xpose.msrb.mxu3 %v355_v38 }
 0x27c   :  { %1032 = vmatmul.msk.bf16.vlgmr.msrb.gmra.mxu2 %vm206_vm8, %v170_v37 }
 0x281   :  { %v278_v39 = vpop.permute.xlu0 %277  ;;  %v160_v40 = vpop.permute.xlu1 %159 }
 0x282   :  { %v283_v41 = vsel %vm206_vm8, %v278_v39, 0  ;;  %v171_v42 = vpack.c.bf16 %v160_v40, %v160_v40  ;;  %v163_v50 = vpop.permute.xlu2 %162 }
 0x283   :  { %292 = vmatpush.bf16.xpose.msrb.mxu0 %v283_v41  ;;  %v172_v52 = vpack.c.bf16 %v163_v50, %v163_v50 }
 0x289   :  { %v153_v43 = vpop.permute.xlu0 %152 }
 0x28a   :  { %v168_v44 = vpack.c.bf16 %v153_v43, %v153_v43  ;;  %v205_v45 = vpop.permute.xlu1 %204  ;;  %1033 = vmatmul.msk.bf16.vlgmr.msrb.gmra.mxu3 %vm206_vm8, %v171_v42 }
 0x28b   :  { %v211_v46 = vsel %vm206_vm8, %v205_v45, 0 }
 0x28c   :  { %220 = vmatpush.bf16.xpose.msra.mxu1 %v211_v46  ;;  %1030 = vmatmul.msk.bf16.vlgmr.msrb.gmra.mxu0 %vm206_vm8, %v168_v44 }
 0x291   :  { %v374_v47 = vpop.permute.xlu0 %373 }
 0x292   :  { %v379_v49 = vsel %vm206_vm8, %v374_v47, 0 }
 0x293   :  { %1027 = vmatmul.msk.bf16.vlgmr.msra.gmra.mxu1 %vm206_vm8, %v165_v48  ;;  %388 = vmatpush.bf16.xpose.msra.mxu0 %v379_v49 }
 0x299   :  { %v302_v51 = vpop.permute.xlu0 %301 }
 0x29a   :  { %v307_v53 = vsel %vm206_vm8, %v302_v51, 0 }
 0x29b   :  { %316 = vmatpush.bf16.xpose.msrb.mxu1 %v307_v53 }
 0x29c   :  { %1034 = vmatmul.msk.bf16.vlgmr.msra.gmra.mxu0 %vm206_vm8, %v172_v52 }
 0x2a3   :  { %1031 = vmatmul.msk.bf16.vlgmr.msrb.gmra.mxu1 %vm206_vm8, %v169_v55 }
 0x2df   :  { %v246_v56 = vpop.f32.mrf.mxu2 }
 0x2e0   :  { %v397_v14 = vsel %vm206_vm8, %v246_v56, -inf }
 0x2e7   :  { %v248_v54 = vpop.f32.mrf.mxu2 }
 0x2fd   :  { %v270_v57 = vpop.f32.mrf.mxu3 }
 0x2fe   :  { %v400_v59 = vsel %vm206_vm8, %v270_v57, -inf }
 0x2ff   :  { %401 = vmax.xlane.f32.xlu1 %v400_v59  ;;  %v342_v60 = vpop.f32.mrf.mxu2 }
 0x300   :  { %v409_v20 = vsel %vm206_vm8, %v342_v60, -inf }
 0x305   :  { %v272_v61 = vpop.f32.mrf.mxu3 }
 0x307   :  { %v344_v63 = vpop.f32.mrf.mxu2 }
 0x309   :  { %v294_v1 = vpop.f32.mrf.mxu0 }
 0x30a   :  { %v403_v3 = vsel %vm206_vm8, %v294_v1, -inf }
 0x30b   :  { %404 = vmax.xlane.f32.xlu0 %v403_v3 }
 0x30d   :  { %v1403_v5 = vpop.f32.mrf.mxu3 }
 0x30e   :  { %v412_v6 = vsel %vm206_vm8, %v1403_v5, -inf }
 0x30f   :  { %413 = vmax.xlane.f32.xlu1 %v412_v6 }
 0x310   :  { %v1407_v7 = vpop.f32.mrf.mxu1 }
 0x311   :  { %v296_v9 = vpop.f32.mrf.mxu0  ;;  %v394_v11 = vsel %vm206_vm8, %v1407_v7, -inf }
 0x312   :  { %395 = vmax.xlane.f32.xlu2 %v394_v11 }
 0x315   :  { %v368_v12 = vpop.f32.mrf.mxu3 }
 0x318   :  { %v224_v13 = vpop.f32.mrf.mxu1 }
 0x319   :  { %v390_v15 = vpop.f32.mrf.mxu0 }
 0x31a   :  { %398 = vmax.xlane.f32.xlu2 %v397_v14  ;;  %v415_v16 = vsel %vm206_vm8, %v390_v15, -inf }
 0x31b   :  { %416 = vmax.xlane.f32.xlu0 %v415_v16 }
 0x320   :  { %v318_v17 = vpop.f32.mrf.mxu1 }
 0x321   :  { %v392_v22 = vpop.f32.mrf.mxu0  ;;  %v406_v23 = vsel %vm206_vm8, %v318_v17, -inf }
 0x322   :  { %410 = vmax.xlane.f32.xlu2 %v409_v20 }
 0x323   :  { %407 = vmax.xlane.f32.xlu0 %v406_v23 }
 0x328   :  { %v320_v25 = vpop.f32.mrf.mxu1 }
 0x337   :  { %554 = vrot.lane.b32.xlu0 %v1351_v8, %s1219_s15 }
 0x33f   :  { %596 = vrot.lane.b32.xlu0 %v1359_v18, %s1219_s15 }
 0x347   :  { %617 = vrot.lane.b32.xlu0 %v1347_v4, %s1219_s15 }
 0x372   :  { %v402_v26 = vpop.xlane.xlu1 %401 }
 0x373   :  { %v420_v27 = vsub.f32 %v270_v57, %v402_v26 }
 0x375   :  { %v430_v28 = vmul.f32 1.442695, %v420_v27 }
 0x377   :  { %1148 = vpow2.f32 %v430_v28 }
 0x37d   :  { %v1421_v29 = vpop.eup %1148 }
 0x37e   :  { %v405_v30 = vpop.xlane.xlu0 %404  ;;  %v448_v31 = vsel %vm206_vm8, %v1421_v29, 0.0 }
 0x37f   :  { %v421_v32 = vsub.f32 %v294_v1, %v405_v30  ;;  %449 = vadd.xlane.f32.xlu0 %v448_v31 }
 0x381   :  { %v432_v33 = vmul.f32 1.442695, %v421_v32 }
 0x382   :  { %v414_v53 = vpop.xlane.xlu1 %413 }
 0x383   :  { %1150 = vpow2.f32 %v432_v33 }
 0x385   :  { %v396_v8 = vpop.xlane.xlu2 %395 }
 0x389   :  { %v1151_v34 = vpop.eup %1150 }
 0x38a   :  { %v451_v18 = vsel %vm206_vm8, %v1151_v34, 0.0 }
 0x38b   :  { %452 = vadd.xlane.f32.xlu2 %v451_v18 }
 0x38d   :  { %v399_v4 = vpop.xlane.xlu2 %398 }
 0x38e   :  { %v419_v35 = vsub.f32 %v246_v56, %v399_v4  ;;  %v417_v39 = vpop.xlane.xlu0 %416 }
 0x38f   :  { %v425_v48 = vsub.f32 %v390_v15, %v417_v39 }
 0x390   :  { %v428_v36 = vmul.f32 1.442695, %v419_v35 }
 0x391   :  { %v440_v49 = vmul.f32 1.442695, %v425_v48 }
 0x392   :  { %1152 = vpow2.f32 %v428_v36 }
 0x395   :  { %v411_v37 = vpop.xlane.xlu2 %410 }
 0x396   :  { %v423_v38 = vsub.f32 %v342_v60, %v411_v37  ;;  %v408_v44 = vpop.xlane.xlu0 %407 }
 0x397   :  { %v422_v50 = vsub.f32 %v318_v17, %v408_v44 }
 0x398   :  { %v1426_v40 = vpop.eup %1152  ;;  %v436_v41 = vmul.f32 1.442695, %v423_v38 }
 0x399   :  { %v445_v42 = vsel %vm206_vm8, %v1426_v40, 0.0  ;;  %v434_v51 = vmul.f32 1.442695, %v422_v50 }
 0x39a   :  { %1154 = vpow2.f32 %v436_v41  ;;  %446 = vadd.xlane.f32.xlu1 %v445_v42 }
 0x39b   :  { %1156 = vpow2.f32 %v440_v49 }
 0x39c   :  { %1158 = vpow2.f32 %v434_v51 }
 0x3a0   :  { %v1430_v43 = vpop.eup %1154 }
 0x3a1   :  { %v457_v45 = vsel %vm206_vm8, %v1430_v43, 0.0  ;;  %v1441_v52 = vpop.eup %1156 }
 0x3a2   :  { %458 = vadd.xlane.f32.xlu0 %v457_v45  ;;  %v463_v55 = vsel %vm206_vm8, %v1441_v52, 0.0  ;;  %v1447_v54 = vpop.eup %1158 }
 0x3a3   :  { %533 = vrot.lane.b32.xlu2 %v1341_v62, %s1219_s15  ;;  %v424_v62 = vsub.f32 %v1403_v5, %v414_v53  ;;  %v454_v57 = vsel %vm206_vm8, %v1447_v54, 0.0 }
 0x3a5   :  { %v438_v56 = vmul.f32 1.442695, %v424_v62 }
 0x3a7   :  { %1160 = vpow2.f32 %v438_v56 }
 0x3a9   :  { %v555_v46 = vpop.permute.xlu0 %554 }
 0x3aa   :  { %v560_v47 = vsel %vm495_vm9, %v555_v46, 0 }
 0x3ab   :  { %569 = vmatpush.bf16.msrb.mxu0 %v560_v47 }
 0x3ad   :  { %v1161_v59 = vpop.eup %1160 }
 0x3ae   :  { %v460_v61 = vsel %vm206_vm8, %v1161_v59, 0.0 }
 0x3b1   :  { %v597_v1 = vpop.permute.xlu0 %596 }
 0x3b2   :  { %v602_v26 = vsel %vm495_vm9, %v597_v1, 0 }
 0x3b3   :  { %512 = vrot.lane.b32.xlu1 %v1337_v58, %s1219_s15  ;;  %v418_v58 = vsub.f32 %v1407_v7, %v396_v8 }
 0x3b6   :  { %638 = vrot.lane.b32.xlu0 %v1369_v21, %s1219_s15  ;;  %v426_v21 = vmul.f32 1.442695, %v418_v58 }
 0x3b8   :  { %1162 = vpow2.f32 %v426_v21 }
 0x3b9   :  { %v618_v3 = vpop.permute.xlu0 %617 }
 0x3ba   :  { %v623_v15 = vsel %vm495_vm9, %v618_v3, 0 }
 0x3be   :  { %v1451_v60 = vpop.eup %1162 }
 0x3bf   :  { %v442_v63 = vsel %vm206_vm8, %v1451_v60, 0.0 }
 0x3cc   :  { %464 = vadd.xlane.f32.xlu2 %v463_v55 }
 0x3d4   :  { %455 = vadd.xlane.f32.xlu2 %v454_v57 }
 0x3dd   :  { %461 = vadd.xlane.f32.xlu1 %v460_v61 }
 0x3e0   :  { %443 = vadd.xlane.f32.xlu0 %v442_v63 }
 0x3ec   :  { %575 = vrot.lane.b32.xlu2 %v1375_v24, %s1219_s15 }
 0x3f2   :  { %v450_v5 = vpop.xlane.xlu0 %449 }
 0x3f3   :  { %1164 = vrcp.f32 %v450_v5 }
 0x3f6   :  { %490 = vrot.lane.b32.xlu1 %v1361_v19, %s1219_s15 }
 0x3f9   :  { %v1165_v7 = vpop.eup %1164 }
 0x3fa   :  { %v476_v11 = vmul.f32 %v1165_v7, %v1421_v29  ;;  %v1098_v7 = vld [vmem:[%s1585_s4 + $0x8] sm:$0xff] }
 0x3fc   :  { %v484_v24 = vpack.c.bf16 %v476_v11, %v476_v11 }
 0x3fe   :  { %v453_v6 = vpop.xlane.xlu2 %452 }
 0x3ff   :  { %1166 = vrcp.f32 %v453_v6 }
 0x405   :  { %v1167_v9 = vpop.eup %1166 }
 0x406   :  { %v477_v12 = vmul.f32 %v1167_v9, %v1151_v34  ;;  %v534_v13 = vpop.permute.xlu2 %533  ;;  %v1097_v9 = vld [vmem:[%s1585_s4] sm:$0xff] }
 0x407   :  { %v539_v14 = vsel %vm495_vm9, %v534_v13, 0 }
 0x408   :  { %v485_v16 = vpack.c.bf16 %v477_v12, %v477_v12  ;;  %548 = vmatpush.bf16.msra.mxu3 %v539_v14 }
 0x40a   :  { %1038 = vmatmul.msk.bf16.vlgmr.msrb.gmra.mxu0 %vm206_vm8, %v485_v16 }
 0x40b   :  { %1037 = vmatmul.msk.bf16.vlgmr.msra.gmra.mxu3 %vm206_vm8, %v484_v24 }
 0x40c   :  { %632 = vmatpush.bf16.msrb.mxu3 %v623_v15 }
 0x40d   :  { %v447_v19 = vpop.xlane.xlu1 %446 }
 0x40e   :  { %1168 = vrcp.f32 %v447_v19 }
 0x414   :  { %v1169_v20 = vpop.eup %1168 }
 0x415   :  { %v459_v17 = vpop.xlane.xlu0 %458  ;;  %v475_v22 = vmul.f32 %v1169_v20, %v1426_v40 }
 0x416   :  { %1170 = vrcp.f32 %v459_v17 }
 0x417   :  { %v483_v27 = vpack.c.bf16 %v475_v22, %v475_v22 }
 0x41c   :  { %v1171_v30 = vpop.eup %1170 }
 0x41d   :  { %v479_v31 = vmul.f32 %v1171_v30, %v1430_v43 }
 0x41f   :  { %v487_v32 = vpack.c.bf16 %v479_v31, %v479_v31 }
 0x425   :  { %v513_v23 = vpop.permute.xlu1 %512 }
 0x426   :  { %v518_v25 = vsel %vm495_vm9, %v513_v23, 0 }
 0x427   :  { %527 = vmatpush.bf16.msra.mxu2 %v518_v25 }
 0x428   :  { %v639_v28 = vpop.permute.xlu0 %638 }
 0x429   :  { %v644_v29 = vsel %vm495_vm9, %v639_v28, 0 }
 0x42a   :  { %1036 = vmatmul.msk.bf16.vlgmr.msra.gmra.mxu2 %vm206_vm8, %v483_v27  ;;  %653 = vmatpush.bf16.msra.mxu0 %v644_v29  ;;  %v1137_v29 = vld [vmem:[%s1586_s5] ss:$0 sm:$0xff]  ;;  %s1223_s5 = smov [#allocation2]  }
 0x42b   :  { %611 = vmatpush.bf16.msrb.mxu2 %v602_v26  ;;  %s1004_s24 = sshll.u32 %s1223_s5, 4  ;;  %s1005_s24 = int_to_ptr.vmem [resolvable:$true] %s1004_s24 }
 0x43a   :  { %1040 = vmatmul.msk.bf16.vlgmr.msrb.gmra.mxu2 %vm206_vm8, %v487_v32 }
 0x43f   :  { %v465_v33 = vpop.xlane.xlu2 %464 }
 0x440   :  { %1172 = vrcp.f32 %v465_v33 }
 0x446   :  { %v1173_v8 = vpop.eup %1172 }
 0x447   :  { %v481_v34 = vmul.f32 %v1173_v8, %v1441_v52  ;;  %v456_v39 = vpop.xlane.xlu2 %455 }
 0x449   :  { %v489_v18 = vpack.c.bf16 %v481_v34, %v481_v34 }
 0x44b   :  { %1042 = vmatmul.msk.bf16.vlgmr.msra.gmra.mxu0 %vm206_vm8, %v489_v18 }
 0x44f   :  { %v576_v41 = vpop.permute.xlu2 %575 }
 0x450   :  { %v462_v4 = vpop.xlane.xlu1 %461  ;;  %v581_v45 = vsel %vm495_vm9, %v576_v41, 0 }
 0x451   :  { %1174 = vrcp.f32 %v462_v4 }
 0x453   :  { %v444_v38 = vpop.xlane.xlu0 %443 }
 0x454   :  { %1176 = vrcp.f32 %v444_v38 }
 0x455   :  { %1178 = vrcp.f32 %v456_v39 }
 0x457   :  { %v1175_v35 = vpop.eup %1174 }
 0x458   :  { %v480_v36 = vmul.f32 %v1175_v35, %v1161_v59 }
 0x45a   :  { %v488_v37 = vpack.c.bf16 %v480_v36, %v480_v36  ;;  %v1177_v40 = vpop.eup %1176 }
 0x45b   :  { %v474_v42 = vmul.f32 %v1177_v40, %v1451_v60  ;;  %v1179_v47 = vpop.eup %1178 }
 0x45c   :  { %1041 = vmatmul.msk.bf16.vlgmr.msrb.gmra.mxu3 %vm206_vm8, %v488_v37  ;;  %v478_v48 = vmul.f32 %v1179_v47, %v1447_v54 }
 0x45d   :  { %v482_v46 = vpack.c.bf16 %v474_v42, %v474_v42 }
 0x45e   :  { %v486_v49 = vpack.c.bf16 %v478_v48, %v478_v48 }
 0x468   :  { %v491_v43 = vpop.permute.xlu1 %490 }
 0x469   :  { %v497_v44 = vsel %vm495_vm9, %v491_v43, 0  ;;  %v1100_v43 = vld [vmem:[%s1589_s8 + $0x8] sm:$0xff] }
 0x46a   :  { %506 = vmatpush.bf16.msra.mxu1 %v497_v44  ;;  %817 = vmatpush.bf16.msra.mxu2 %v1100_v43  ;;  %v1103_v43 = vld [vmem:[%s1591_s10 + $0x10] sm:$0xff] }
 0x46d   :  { %1035 = vmatmul.msk.bf16.vlgmr.msra.gmra.mxu1 %vm206_vm8, %v482_v46  ;;  %v1099_v46 = vld [vmem:[%s1589_s8] sm:$0xff]  ;;  %s1006_s8 = sshll.u32 %s1593_s12, 4  ;;  %s1007_s8 = int_to_ptr.hbm [resolvable:$true] %s1006_s8 }
 0x46e   :  { %590 = vmatpush.bf16.msrb.mxu1 %v581_v45  ;;  %818 = vmatpush.bf16.msra.mxu2 %v1099_v46 }
 0x472   :  { %721 = vmatpush.bf16.msra.mxu1 %v1098_v7 }
 0x476   :  { %722 = vmatpush.bf16.msra.mxu1 %v1097_v9 }
 0x47d   :  { %1039 = vmatmul.msk.bf16.vlgmr.msrb.gmra.mxu1 %vm206_vm8, %v486_v49 }
 0x487   :  { %v571_v50 = vpop.f32.mrf.mxu0 }
 0x48e   :  { %v550_v51 = vpop.f32.mrf.mxu3 }
 0x48f   :  { %v573_v52 = vpop.f32.mrf.mxu0 }
 0x496   :  { %v552_v53 = vpop.f32.mrf.mxu3 }
 0x4ad   :  { %v529_v62 = vpop.f32.mrf.mxu2 }
 0x4b5   :  { %v531_v55 = vpop.f32.mrf.mxu2 }
 0x4bd   :  { %v613_v58 = vpop.f32.mrf.mxu2 }
 0x4be   :  { %v1120_v56 = vpack.i.bf16 %v613_v58, %v529_v62 }
 0x4c0   :  { %1121 = vrot.lane.b32.xlu1 %v1120_v56, %s1220_s16 }
 0x4c5   :  { %v615_v21 = vpop.f32.mrf.mxu2 }
 0x4c8   :  { %v655_v57 = vpop.f32.mrf.mxu0 }
 0x4c9   :  { %v1130_v59 = vpack.i.bf16 %v655_v57, %v571_v50 }
 0x4cb   :  { %1131 = vrot.lane.b32.xlu2 %v1130_v59, %s1221_s17 }
 0x4d0   :  { %v657_v54 = vpop.f32.mrf.mxu0 }
 0x4df   :  { %v634_v60 = vpop.f32.mrf.mxu3 }
 0x4e0   :  { %v1125_v61 = vpack.i.bf16 %v634_v60, %v550_v51 }
 0x4e2   :  { %1126 = vrot.lane.b32.xlu1 %v1125_v61, %s1222_s18 }
 0x4e7   :  { %v636_v63 = vpop.f32.mrf.mxu3 }
 0x4ea   :  { %v508_v1 = vpop.f32.mrf.mxu1 }
 0x4f2   :  { %v510_v3 = vpop.f32.mrf.mxu1 }
 0x4f3   :  { %v1139_v3 = vld [vmem:[%s1588_s7] ss:$0 sm:$0xff] }
 0x4fa   :  { %v592_v5 = vpop.f32.mrf.mxu1 }
 0x502   :  { %v594_v6 = vpop.f32.mrf.mxu1 }
 0x525   :  { %v1132_v14 = vpop.permute.xlu2 %1131 }
 0x526   :  { %v1134_v19 = vunpack.i.h.bf16 %v1132_v14  ;;  %v1133_v17 = vunpack.i.l.bf16 %v1132_v14 }
 0x532   :  { %v1122_v11 = vpop.permute.xlu1 %1121 }
 0x533   :  { %v1124_v12 = vunpack.i.h.bf16 %v1122_v11  ;;  %v1123_v13 = vunpack.i.l.bf16 %v1122_v11 }
 0x535   :  { %v671_v20 = vsel %vm206_vm8, %v508_v1, %v1123_v13  ;;  %v688_v22 = vsel %vm206_vm8, %v592_v5, %v1124_v12  ;;  %v1140_v13 = vld [vmem:[%s1590_s9] ss:$0 sm:$0xff] }
 0x554   :  { %v1127_v15 = vpop.permute.xlu1 %1126 }
 0x555   :  { %v1129_v16 = vunpack.i.h.bf16 %v1127_v15  ;;  %v1128_v24 = vunpack.i.l.bf16 %v1127_v15 }
 0x557   :  { %v673_v23 = vsel %vm672_vm10, %v671_v20, %v1128_v24  ;;  %v689_v25 = vsel %vm672_vm10, %v688_v22, %v1129_v16  ;;  %v1108_v16 = vld [vmem:[%s1591_s10 + $0x38] sm:$0xff] }
 0x558   :  { %v675_v26 = vsel %vm674_vm11, %v673_v23, %v1133_v17  ;;  %v690_v27 = vsel %vm674_vm11, %v689_v25, %v1134_v19  ;;  %982 = vmatpush.bf16.msra.mxu3 %v1108_v16  ;;  %v1107_v17 = vld [vmem:[%s1591_s10 + $0x30] sm:$0xff] }
 0x559   :  { %v691_v28 = vpack.c.bf16 %v690_v27, %v675_v26  ;;  %v1106_v27 = vld [vmem:[%s1591_s10 + $0x28] sm:$0xff] }
 0x55b   :  { %1051 = vmatmul.msk.bf16.vlgmr.msra.gmra.mxu1 %vm47_vm0, %v691_v28 }
 0x55c   :  { %983 = vmatpush.bf16.msra.mxu3 %v1107_v17 }
 0x560   :  { %984 = vmatpush.bf16.msra.mxu3 %v1106_v27 }
 0x5d8   :  { %v724_v30 = vpop.f32.mrf.mxu1 }
 0x5d9   :  { %v725_v31 = vadd.f32 %v1137_v29, %v724_v30 }
 0x5db   :  { %v1495_v32 = vadd.f32 %v725_v31, %v1293_v0 }
 0x5dd   :  { %v733_v33 = vsel %vm47_vm0, %v1495_v32, 0.0 }
 0x5de   :  { %734 = vadd.xlane.f32.xlu0 %v733_v33  ;;  %v1105_v33 = vld [vmem:[%s1591_s10 + $0x20] sm:$0xff] }
 0x5df   :  { %985 = vmatpush.bf16.msra.mxu3 %v1105_v33 }
 0x5e0   :  { %v726_v8 = vpop.f32.mrf.mxu1 }
 0x5e1   :  { %v727_v34 = vadd.f32 %v1137_v29, %v726_v8 }
 0x5e3   :  { %v1500_v18 = vadd.f32 %v727_v34, %v1300_v2 }
 0x5e5   :  { %v736_v4 = vsel %vm47_vm0, %v1500_v18, 0.0 }
 0x5e6   :  { %737 = vadd.xlane.f32.xlu1 %v736_v4 }
 0x651   :  { %v735_v35 = vpop.xlane.xlu0 %734 }
 0x652   :  { %v739_v36 = vmul.f32 %v735_v35, %v1304_v10 }
 0x654   :  { %v741_v37 = vsub.f32 %v1495_v32, %v739_v36 }
 0x656   :  { %v743_v0 = vmul.f32 %v741_v37, %v741_v37 }
 0x658   :  { %v745_v38 = vsel %vm47_vm0, %v743_v0, 0.0 }
 0x659   :  { %v738_v39 = vpop.xlane.xlu1 %737  ;;  %746 = vadd.xlane.f32.xlu2 %v745_v38 }
 0x65a   :  { %v740_v40 = vmul.f32 %v738_v39, %v1304_v10 }
 0x65c   :  { %v742_v41 = vsub.f32 %v1500_v18, %v740_v40 }
 0x65e   :  { %v744_v2 = vmul.f32 %v742_v41, %v742_v41 }
 0x660   :  { %v748_v42 = vsel %vm47_vm0, %v744_v2, 0.0 }
 0x661   :  { %749 = vadd.xlane.f32.xlu0 %v748_v42 }
 0x6cc   :  { %v747_v44 = vpop.xlane.xlu2 %746 }
 0x6cd   :  { %v751_v45 = vmul.f32 %v747_v44, %v1304_v10 }
 0x6cf   :  { %v753_v47 = vadd.f32 1e-05, %v751_v45 }
 0x6d1   :  { %1180 = vrsqrt.f32 %v753_v47  ;;  %vm761_vm13 = vweird.f32 %v753_v47 }
 0x6d4   :  { %v750_v48 = vpop.xlane.xlu0 %749 }
 0x6d5   :  { %v752_v49 = vmul.f32 %v750_v48, %v1304_v10  ;;  %v1138_v10 = vld [vmem:[%s1587_s6] ss:$0 sm:$0xff] }
 0x6d7   :  { %v1181_v50 = vpop.eup %1180  ;;  %v754_v51 = vadd.f32 1e-05, %v752_v49 }
 0x6d8   :  { %v756_v52 = vmul.f32 %v1181_v50, %v753_v47  ;;  %vm762_vm12 = vweird.f32 %v1181_v50 }
 0x6d9   :  { %1182 = vrsqrt.f32 %v754_v51  ;;  %vm763_vm14 = vmor %vm761_vm13, %vm762_vm12  ;;  %vm771_vm1 = vweird.f32 %v754_v51 }
 0x6da   :  { %v757_v53 = vmul.f32 %v1181_v50, %v756_v52 }
 0x6dc   :  { %v758_v62 = vmul.f32 0.5, %v757_v53 }
 0x6de   :  { %v759_v55 = vsub.f32 1.5, %v758_v62 }
 0x6df   :  { %v1183_v58 = vpop.eup %1182 }
 0x6e0   :  { %v760_v56 = vmul.f32 %v1181_v50, %v759_v55  ;;  %v766_v21 = vmul.f32 %v1183_v58, %v754_v51  ;;  %vm772_vm15 = vweird.f32 %v1183_v58  ;;  %v1102_v51 = vld [vmem:[%s1591_s10 + $0x8] sm:$0xff] }
 0x6e1   :  { %vm773_vm2 = vmor %vm771_vm1, %vm772_vm15 }
 0x6e2   :  { %v767_v57 = vmul.f32 %v1183_v58, %v766_v21  ;;  %v764_v59 = vsel %vm763_vm14, %v1181_v50, %v760_v56  ;;  %v1101_v56 = vld [vmem:[%s1591_s10] sm:$0xff] }
 0x6e3   :  { %v775_v61 = vmul.f32 %v764_v59, %v741_v37  ;;  %v1104_v37 = vld [vmem:[%s1591_s10 + $0x18] sm:$0xff] }
 0x6e4   :  { %v768_v54 = vmul.f32 0.5, %v767_v57  ;;  %986 = vmatpush.bf16.msra.mxu3 %v1104_v37 }
 0x6e5   :  { %v780_v5 = vmul.f32 %v1138_v10, %v775_v61 }
 0x6e6   :  { %v769_v60 = vsub.f32 1.5, %v768_v54 }
 0x6e7   :  { %v785_v9 = vadd.f32 %v1139_v3, %v780_v5 }
 0x6e8   :  { %v770_v63 = vmul.f32 %v1183_v58, %v769_v60  ;;  %987 = vmatpush.bf16.msra.mxu3 %v1103_v43 }
 0x6ea   :  { %v774_v1 = vsel %vm773_vm2, %v1183_v58, %v770_v63 }
 0x6eb   :  { %v776_v6 = vmul.f32 %v774_v1, %v742_v41 }
 0x6ec   :  { %988 = vmatpush.bf16.msra.mxu3 %v1102_v51 }
 0x6ed   :  { %v781_v7 = vmul.f32 %v1138_v10, %v776_v6 }
 0x6ef   :  { %v786_v11 = vadd.f32 %v1139_v3, %v781_v7 }
 0x6f0   :  { %989 = vmatpush.bf16.msra.mxu3 %v1101_v56 }
 0x6f1   :  { %v787_v12 = vpack.c.bf16 %v786_v11, %v785_v9 }
 0x6f3   :  { %1060 = vmatmul.msk.bf16.vlgmr.msra.gmra.mxu2 %vm47_vm0, %v787_v12 }
 0x776   :  { %v820_v14 = vpop.f32.mrf.mxu2 }
 0x777   :  { %v1528_v15 = vadd.f32 %v1140_v13, %v820_v14 }
 0x779   :  { %v1534_v24 = vmul.f32 0.70710677, %v1528_v15 }
 0x77b   :  { %v829_v19 = vmul.f32 %v1534_v24, %v1534_v24 }
 0x77d   :  { %v830_v20 = vmin.f32 %v829_v19, 16.0 }
 0x77e   :  { %v822_v22 = vpop.f32.mrf.mxu2 }
 0x77f   :  { %v831_v23 = vmul.f32 2.1237322e-06, %v830_v20  ;;  %v842_v25 = vmul.f32 3.8918573e-05, %v830_v20  ;;  %v1541_v26 = vadd.f32 %v1140_v13, %v822_v22 }
 0x781   :  { %v832_v28 = vadd.f32 0.00028619796, %v831_v23  ;;  %v843_v29 = vadd.f32 0.001143296, %v842_v25  ;;  %v1547_v30 = vmul.f32 0.70710677, %v1541_v26 }
 0x783   :  { %v844_v31 = vmul.f32 %v843_v29, %v830_v20  ;;  %v869_v8 = vmul.f32 %v1547_v30, %v1547_v30  ;;  %v833_v34 = vmul.f32 %v832_v28, %v830_v20 }
 0x785   :  { %v845_v4 = vadd.f32 0.014752088, %v844_v31  ;;  %v870_v35 = vmin.f32 %v869_v8, 16.0  ;;  %v834_v39 = vadd.f32 0.0036580483, %v833_v34 }
 0x787   :  { %v846_v36 = vmul.f32 %v845_v4, %v830_v20  ;;  %v871_v0 = vmul.f32 2.1237322e-06, %v870_v35  ;;  %v882_v38 = vmul.f32 3.8918573e-05, %v870_v35  ;;  %v835_v46 = vmul.f32 %v834_v39, %v830_v20 }
 0x789   :  { %v847_v40 = vadd.f32 0.112945676, %v846_v36  ;;  %v872_v41 = vadd.f32 0.00028619796, %v871_v0  ;;  %v883_v2 = vadd.f32 0.001143296, %v882_v38 }
 0x78a   :  { %v836_v53 = vadd.f32 0.05243302, %v835_v46 }
 0x78b   :  { %v848_v42 = vmul.f32 %v847_v40, %v830_v20  ;;  %v873_v44 = vmul.f32 %v872_v41, %v870_v35  ;;  %v884_v45 = vmul.f32 %v883_v2, %v870_v35  ;;  %v825_v40 = vmul.f32 0.5, %v1528_v15 }
 0x78c   :  { %v837_v57 = vmul.f32 %v836_v53, %v830_v20  ;;  %v826_v41 = vmul.f32 0.5, %v1541_v26 }
 0x78d   :  { %v849_v47 = vadd.f32 0.4994258, %v848_v42  ;;  %v874_v48 = vadd.f32 0.0036580483, %v873_v44  ;;  %v885_v49 = vadd.f32 0.014752088, %v884_v45 }
 0x78e   :  { %v838_v61 = vadd.f32 0.18741608, %v837_v57  ;;  %v1141_v45 = vld [vmem:[%s1592_s11] ss:$0 sm:$0xff]  ;;  %s1224_s11 = smov 128  }
 0x78f   :  { %v850_v50 = vmul.f32 %v849_v47, %v830_v20  ;;  %v886_v52 = vmul.f32 %v885_v49, %v870_v35  ;;  %v875_v55 = vmul.f32 %v874_v48, %v870_v35 }
 0x790   :  { %v839_v6 = vmul.f32 %v838_v61, %v830_v20 }
 0x791   :  { %v851_v62 = vadd.f32 1.0, %v850_v50  ;;  %v887_v58 = vadd.f32 0.112945676, %v886_v52  ;;  %v876_v59 = vadd.f32 0.05243302, %v875_v55 }
 0x792   :  { %v840_v14 = vadd.f32 1.1283791, %v839_v6 }
 0x793   :  { %1184 = vrcp.f32 %v851_v62  ;;  %v888_v21 = vmul.f32 %v887_v58, %v870_v35  ;;  %v877_v1 = vmul.f32 %v876_v59, %v870_v35  ;;  %v863_v9 = vand.u32 2147483648, %v851_v62 }
 0x794   :  { %v861_v12 = vand.u32 2147483647, %v851_v62  ;;  %vm857_vm4 = vweird.f32 %v851_v62  ;;  %v841_v27 = vmul.f32 %v840_v14, %v1534_v24 }
 0x795   :  { %v889_v54 = vadd.f32 0.4994258, %v888_v21  ;;  %v878_v11 = vadd.f32 0.18741608, %v877_v1  ;;  %v864_v17 = vor.u32 1.1754944e-38, %v863_v9 }
 0x796   :  { %vm862_vm6 = vcmp.eq.f32.partialorder %v861_v12, 8.507059e+37 }
 0x797   :  { %v890_v60 = vmul.f32 %v889_v54, %v870_v35  ;;  %v879_v22 = vmul.f32 %v878_v11, %v870_v35 }
 0x799   :  { %v1185_v10 = vpop.eup %1184  ;;  %v891_v3 = vadd.f32 1.0, %v890_v60  ;;  %v880_v20 = vadd.f32 1.1283791, %v879_v22 }
 0x79a   :  { %v853_v63 = vmul.f32 %v1185_v10, %v851_v62  ;;  %vm858_vm3 = vweird.f32 %v1185_v10 }
 0x79b   :  { %1186 = vrcp.f32 %v891_v3  ;;  %vm859_vm5 = vmor %vm857_vm4, %vm858_vm3  ;;  %v903_v29 = vand.u32 2147483648, %v891_v3  ;;  %v901_v8 = vand.u32 2147483647, %v891_v3  ;;  %vm897_vm8 = vweird.f32 %v891_v3 }
 0x79c   :  { %v854_v5 = vsub.f32 1.0, %v853_v63  ;;  %v881_v37 = vmul.f32 %v880_v20, %v1547_v30 }
 0x79d   :  { %v904_v4 = vor.u32 1.1754944e-38, %v903_v29  ;;  %vm902_vm10 = vcmp.eq.f32.partialorder %v901_v8, 8.507059e+37 }
 0x79e   :  { %v855_v7 = vmul.f32 %v1185_v10, %v854_v5 }
 0x7a0   :  { %v856_v13 = vadd.f32 %v1185_v10, %v855_v7 }
 0x7a1   :  { %v1187_v16 = vpop.eup %1186 }
 0x7a2   :  { %v860_v19 = vsel %vm859_vm5, %v1185_v10, %v856_v13  ;;  %v893_v23 = vmul.f32 %v1187_v16, %v891_v3  ;;  %vm898_vm7 = vweird.f32 %v1187_v16 }
 0x7a3   :  { %v865_v25 = vsel %vm862_vm6, %v864_v17, %v860_v19  ;;  %vm899_vm9 = vmor %vm897_vm8, %vm898_vm7 }
 0x7a4   :  { %v894_v28 = vsub.f32 1.0, %v893_v23  ;;  %v866_v31 = vmul.f32 %v865_v25, %v841_v27 }
 0x7a6   :  { %v895_v33 = vmul.f32 %v1187_v16, %v894_v28  ;;  %v1061_v36 = vclamps-f32 %v866_v31, 1.0 }
 0x7a8   :  { %v896_v34 = vadd.f32 %v1187_v16, %v895_v33  ;;  %v909_v39 = vadd.f32 1.0, %v1061_v36 }
 0x7aa   :  { %v900_v35 = vsel %vm899_vm9, %v1187_v16, %v896_v34  ;;  %v911_v42 = vmul.f32 %v909_v39, %v825_v40 }
 0x7ab   :  { %v905_v0 = vsel %vm902_vm10, %v904_v4, %v900_v35 }
 0x7ac   :  { %v906_v38 = vmul.f32 %v905_v0, %v881_v37 }
 0x7ae   :  { %v1062_v24 = vclamps-f32 %v906_v38, 1.0 }
 0x7b0   :  { %v910_v2 = vadd.f32 1.0, %v1062_v24 }
 0x7b2   :  { %v912_v43 = vmul.f32 %v910_v2, %v826_v41 }
 0x7b4   :  { %v913_v44 = vpack.c.bf16 %v912_v43, %v911_v42 }
 0x7b6   :  { %990 = vmatmul.bf16.vlgmr.msra.gmra.mxu3 %v913_v44 }
 0x839   :  { %v991_v30 = vpop.f32.mrf.mxu3 }
 0x83a   :  { %v992_v46 = vadd.f32 %v1141_v45, %v991_v30 }
 0x83c   :  { %v996_v47 = vadd.f32 %v992_v46, %v1495_v32 }
 0x83e   :  { %998 = vst.msk [vmem:[#allocation2] sm:$0xff] %vm47_vm0, %v996_v47 }
 0x841   :  { %v993_v15 = vpop.f32.mrf.mxu3 }
 0x842   :  { %v994_v26 = vadd.f32 %v1141_v45, %v993_v15 }
 0x844   :  { %v997_v48 = vadd.f32 %v994_v26, %v1500_v18 }
 0x846   :  { %999 = vst.msk [vmem:[#allocation2 + $0x8] sm:$0xff] %vm47_vm0, %v997_v48 }
 0x847   :  { %1012 = dma.vmem_to_hbm [thread:$0]  %s1005_s24, 256, %s1007_s8, [#allocation3], %s1224_s11, %s1224_s11, %s1220_s16  }
 0x848   :  { %1212 = dma.done.wait [#allocation3], 256  }
 0x849   :  { %1213 = vsyncadd [#allocation3], 4294967040 }
 0x84a   :  { %1017 = vsyncpa [#allocation3], 1 }

// kernel: tpu_custom_call.1
= control target key start
LH: loop header
LB: loop body
LE: loop exit
PB: predicated region body
PF: predicated region fallthrough
CT: control target
= control target key end

     0   :  { %vm47_vm0 = vcmask 261120   ;;  %s1581_s0 = inlined_call_operand.vmem [shape: f32[16,32], index: 0, kind: input, shape index: {}]   ;;  %s1582_s1 = inlined_call_operand.vmem [shape: f32[1,32], index: 1, kind: input, shape index: {}]   ;;  %s1583_s2 = inlined_call_operand.vmem [shape: f32[1,32], index: 2, kind: input, shape index: {}]   ;;  %s1584_s3 = inlined_call_operand.vmem [shape: bf16[32,96], index: 3, kind: input, shape index: {}]   ;;  %s1585_s4 = inlined_call_operand.vmem [shape: bf16[32,32], index: 4, kind: input, shape index: {}]   ;;  %s1586_s5 = inlined_call_operand.vmem [shape: f32[1,32], index: 5, kind: input, shape index: {}]   ;;  %s1587_s6 = inlined_call_operand.vmem [shape: f32[1,32], index: 6, kind: input, shape index: {}]   ;;  %s1588_s7 = inlined_call_operand.vmem [shape: f32[1,32], index: 7, kind: input, shape index: {}]   ;;  %s1589_s8 = inlined_call_operand.vmem [shape: bf16[32,128], index: 8, kind: input, shape index: {}]   ;;  %s1590_s9 = inlined_call_operand.vmem [shape: f32[1,128], index: 9, kind: input, shape index: {}]   ;;  %s1591_s10 = inlined_call_operand.vmem [shape: bf16[128,32], index: 10, kind: input, shape index: {}]   ;;  %s1592_s11 = inlined_call_operand.vmem [shape: f32[1,32], index: 11, kind: input, shape index: {}]   ;;  %s1593_s12 = inlined_call_operand.hbm [shape: f32[16,32], index: 12, kind: output, shape index: {}]  }
   0x1   :  { %v1293_v0 = vld [vmem:[%s1581_s0] sm:$0xff] }
   0x2   :  { %v48_v1 = vsel %vm47_vm0, %v1293_v0, 0.0 }
   0x3   :  { %49 = vadd.xlane.f32.xlu0 %v48_v1 }
   0x4   :  { %17 = vsyncpa [#allocation3], 0  ;;  %v1300_v2 = vld [vmem:[%s1581_s0 + $0x8] sm:$0xff]  ;;  %v1214_v4 = vmov 32.0   ;;  %v1095_v23 = vld [vmem:[%s1584_s3] sm:$0xff]  ;;  %s1215_s13 = smov 104  }
   0x5   :  { %v51_v3 = vsel %vm47_vm0, %v1300_v2, 0.0  ;;  %1142 = vrcp.f32 %v1214_v4  ;;  %v1096_v21 = vld [vmem:[%s1584_s3 + $0x8] sm:$0xff]  ;;  %v1135_v42 = vld [vmem:[%s1582_s1] ss:$0 sm:$0xff]  ;;  %s1216_s1 = smov 120   ;;  %s1217_s14 = smov 112  }
   0x6   :  { %135 = vmatpush.bf16.msra.mxu0 %v1096_v21  ;;  %v1136_v47 = vld [vmem:[%s1583_s2] ss:$0 sm:$0xff]  ;;  %s1218_s2 = smov 96   ;;  %vm206_vm8 = vcmask 64512   ;;  %s1219_s15 = smov 64   ;;  %vm495_vm9 = vcmask 1043456  }
   0x7   :  { %s1220_s16 = smov 8   ;;  %s1221_s17 = smov 24   ;;  %vm672_vm10 = vcmask 130048   ;;  %vm674_vm11 = vcmask 195584  }
   0x8   :  { %s1222_s18 = smov 16  }
   0xa   :  { %136 = vmatpush.bf16.msra.mxu0 %v1095_v23 }
   0xb   :  { %52 = vadd.xlane.f32.xlu0 %v51_v3  ;;  %v1143_v5 = vpop.eup %1142 }
   0xc   :  { %v55_v6 = vmul.f32 32.0, %v1143_v5  ;;  %vm59_vm1 = vweird.f32 %v1143_v5 }
   0xe   :  { %v56_v7 = vsub.f32 1.0, %v55_v6 }
  0x10   :  { %v57_v8 = vmul.f32 %v1143_v5, %v56_v7 }
  0x12   :  { %v58_v9 = vadd.f32 %v1143_v5, %v57_v8 }
  0x14   :  { %v1304_v10 = vsel %vm59_vm1, %v1143_v5, %v58_v9 }
  0x76   :  { %v50_v11 = vpop.xlane.xlu0 %49 }
  0x77   :  { %v61_v12 = vmul.f32 %v1304_v10, %v50_v11 }
  0x79   :  { %v63_v13 = vsub.f32 %v1293_v0, %v61_v12 }
  0x7b   :  { %v65_v14 = vmul.f32 %v63_v13, %v63_v13 }
  0x7d   :  { %v67_v15 = vsel %vm47_vm0, %v65_v14, 0.0 }
  0x7e   :  { %68 = vadd.xlane.f32.xlu1 %v67_v15  ;;  %v53_v16 = vpop.xlane.xlu0 %52 }
  0x7f   :  { %v62_v17 = vmul.f32 %v1304_v10, %v53_v16 }
  0x81   :  { %v64_v18 = vsub.f32 %v1300_v2, %v62_v17 }
  0x83   :  { %v66_v19 = vmul.f32 %v64_v18, %v64_v18 }
  0x85   :  { %v70_v20 = vsel %vm47_vm0, %v66_v19, 0.0 }
  0x86   :  { %71 = vadd.xlane.f32.xlu1 %v70_v20 }
  0xf1   :  { %v69_v22 = vpop.xlane.xlu1 %68 }
  0xf2   :  { %v73_v24 = vmul.f32 %v69_v22, %v1304_v10 }
  0xf4   :  { %v75_v25 = vadd.f32 1e-05, %v73_v24 }
  0xf6   :  { %1144 = vrsqrt.f32 %v75_v25  ;;  %vm83_vm3 = vweird.f32 %v75_v25 }
  0xf9   :  { %v72_v26 = vpop.xlane.xlu1 %71 }
  0xfa   :  { %v74_v27 = vmul.f32 %v72_v26, %v1304_v10 }
  0xfc   :  { %v1145_v28 = vpop.eup %1144  ;;  %v76_v29 = vadd.f32 1e-05, %v74_v27 }
  0xfd   :  { %v78_v30 = vmul.f32 %v1145_v28, %v75_v25  ;;  %vm84_vm2 = vweird.f32 %v1145_v28 }
  0xfe   :  { %1146 = vrsqrt.f32 %v76_v29  ;;  %vm85_vm4 = vmor %vm83_vm3, %vm84_vm2  ;;  %vm93_vm6 = vweird.f32 %v76_v29 }
  0xff   :  { %v79_v31 = vmul.f32 %v1145_v28, %v78_v30 }
 0x101   :  { %v80_v32 = vmul.f32 0.5, %v79_v31 }
 0x103   :  { %v81_v33 = vsub.f32 1.5, %v80_v32 }
 0x104   :  { %v1147_v34 = vpop.eup %1146 }
 0x105   :  { %v82_v35 = vmul.f32 %v1145_v28, %v81_v33  ;;  %v88_v36 = vmul.f32 %v1147_v34, %v76_v29  ;;  %vm94_vm5 = vweird.f32 %v1147_v34 }
 0x106   :  { %vm95_vm7 = vmor %vm93_vm6, %vm94_vm5 }
 0x107   :  { %v89_v37 = vmul.f32 %v1147_v34, %v88_v36  ;;  %v86_v38 = vsel %vm85_vm4, %v1145_v28, %v82_v35 }
 0x108   :  { %v97_v41 = vmul.f32 %v86_v38, %v63_v13 }
 0x109   :  { %v90_v39 = vmul.f32 0.5, %v89_v37 }
 0x10a   :  { %v102_v46 = vmul.f32 %v1135_v42, %v97_v41 }
 0x10b   :  { %v91_v40 = vsub.f32 1.5, %v90_v39 }
 0x10c   :  { %v107_v49 = vadd.f32 %v1136_v47, %v102_v46 }
 0x10d   :  { %v92_v43 = vmul.f32 %v1147_v34, %v91_v40 }
 0x10f   :  { %v96_v44 = vsel %vm95_vm7, %v1147_v34, %v92_v43 }
 0x110   :  { %v98_v45 = vmul.f32 %v96_v44, %v64_v18 }
 0x112   :  { %v103_v48 = vmul.f32 %v1135_v42, %v98_v45 }
 0x114   :  { %v108_v50 = vadd.f32 %v1136_v47, %v103_v48 }
 0x116   :  { %v109_v51 = vpack.c.bf16 %v108_v50, %v107_v49 }
 0x118   :  { %1026 = vmatmul.msk.bf16.vlgmr.msra.gmra.mxu0 %vm47_vm0, %v109_v51 }
 0x195   :  { %v138_v52 = vpop.f32.mrf.mxu0 }
 0x196   :  { %180 = vrot.lane.b32.xlu0 %v138_v52, %s1215_s13  ;;  %174 = vrot.lane.b32.xlu2 %v138_v52, %s1216_s1  ;;  %v1331_v54 = vmul.f32 0.35355338, %v138_v52  ;;  %v193_v11 = vpack.c.bf16 %v138_v52, %v138_v52 }
 0x198   :  { %v202_v15 = vunpack.c.l.b16 %v193_v11  ;;  %v165_v48 = vpack.c.bf16 %v1331_v54, %v1331_v54 }
 0x19a   :  { %v1361_v19 = vpack.c.b16 %v202_v15, %v202_v15 }
 0x19d   :  { %v140_v53 = vpop.f32.mrf.mxu0 }
 0x19e   :  { %177 = vrot.lane.b32.xlu2 %v138_v52, %s1217_s14  ;;  %184 = vrot.lane.b32.xlu1 %v140_v53, %s1216_s1  ;;  %v1353_v9 = vmul.f32 0.35355338, %v140_v53  ;;  %v197_v22 = vpack.c.bf16 %v140_v53, %v140_v53 }
 0x1a0   :  { %v299_v23 = vunpack.c.l.b16 %v197_v22 }
 0x1a2   :  { %v1375_v24 = vpack.c.b16 %v299_v23, %v299_v23 }
 0x1a6   :  { %187 = vrot.lane.b32.xlu2 %v140_v53, %s1217_s14  ;;  %149 = vrot.lane.b32.xlu1 %v1331_v54, %s1217_s14 }
 0x1ae   :  { %190 = vrot.lane.b32.xlu2 %v140_v53, %s1215_s13 }
 0x1f0   :  { %v175_v55 = vpop.permute.xlu2 %174 }
 0x1f1   :  { %v194_v56 = vpack.c.bf16 %v175_v55, %v175_v55  ;;  %v169_v55 = vpack.c.bf16 %v1353_v9, %v1353_v9 }
 0x1f3   :  { %v227_v57 = vunpack.c.l.b16 %v194_v56 }
 0x1f5   :  { %v1337_v58 = vpack.c.b16 %v227_v57, %v227_v57 }
 0x1f7   :  { %229 = vrot.lane.b32.xlu2 %v1337_v58, %s1218_s2 }
 0x1f8   :  { %v178_v59 = vpop.permute.xlu2 %177 }
 0x1f9   :  { %v195_v60 = vpack.c.bf16 %v178_v59, %v178_v59 }
 0x1fb   :  { %v251_v61 = vunpack.c.l.b16 %v195_v60 }
 0x1fd   :  { %v1341_v62 = vpack.c.b16 %v251_v61, %v251_v61 }
 0x1ff   :  { %253 = vrot.lane.b32.xlu0 %v1341_v62, %s1218_s2  ;;  %146 = vrot.lane.b32.xlu2 %v1331_v54, %s1216_s1 }
 0x200   :  { %v188_v63 = vpop.permute.xlu2 %187 }
 0x201   :  { %v199_v1 = vpack.c.bf16 %v188_v63, %v188_v63 }
 0x203   :  { %v347_v3 = vunpack.c.l.b16 %v199_v1 }
 0x205   :  { %v1347_v4 = vpack.c.b16 %v347_v3, %v347_v3 }
 0x207   :  { %349 = vrot.lane.b32.xlu1 %v1347_v4, %s1218_s2 }
 0x208   :  { %v181_v5 = vpop.permute.xlu0 %180  ;;  %v191_v14 = vpop.permute.xlu2 %190 }
 0x209   :  { %v196_v6 = vpack.c.bf16 %v181_v5, %v181_v5  ;;  %v200_v17 = vpack.c.bf16 %v191_v14, %v191_v14 }
 0x20b   :  { %v275_v7 = vunpack.c.l.b16 %v196_v6  ;;  %v371_v20 = vunpack.c.l.b16 %v200_v17 }
 0x20d   :  { %v1351_v8 = vpack.c.b16 %v275_v7, %v275_v7  ;;  %v1369_v21 = vpack.c.b16 %v371_v20, %v371_v20 }
 0x20f   :  { %277 = vrot.lane.b32.xlu0 %v1351_v8, %s1218_s2  ;;  %159 = vrot.lane.b32.xlu1 %v1353_v9, %s1217_s14 }
 0x210   :  { %v185_v12 = vpop.permute.xlu1 %184 }
 0x211   :  { %v198_v13 = vpack.c.bf16 %v185_v12, %v185_v12 }
 0x213   :  { %v323_v16 = vunpack.c.l.b16 %v198_v13 }
 0x215   :  { %v1359_v18 = vpack.c.b16 %v323_v16, %v323_v16 }
 0x217   :  { %152 = vrot.lane.b32.xlu0 %v1331_v54, %s1215_s13  ;;  %325 = vrot.lane.b32.xlu2 %v1359_v18, %s1218_s2 }
 0x218   :  { %204 = vrot.lane.b32.xlu1 %v1361_v19, %s1218_s2  ;;  %v150_v29 = vpop.permute.xlu1 %149 }
 0x219   :  { %v167_v34 = vpack.c.bf16 %v150_v29, %v150_v29 }
 0x21f   :  { %373 = vrot.lane.b32.xlu0 %v1369_v21, %s1218_s2  ;;  %156 = vrot.lane.b32.xlu2 %v1353_v9, %s1216_s1 }
 0x227   :  { %301 = vrot.lane.b32.xlu0 %v1375_v24, %s1218_s2  ;;  %162 = vrot.lane.b32.xlu2 %v1353_v9, %s1215_s13 }
 0x251   :  { %v230_v25 = vpop.permute.xlu2 %229 }
 0x252   :  { %v235_v26 = vsel %vm206_vm8, %v230_v25, 0 }
 0x253   :  { %244 = vmatpush.bf16.xpose.msra.mxu2 %v235_v26 }
 0x259   :  { %v147_v27 = vpop.permute.xlu2 %146 }
 0x25a   :  { %v166_v28 = vpack.c.bf16 %v147_v27, %v147_v27 }
 0x25c   :  { %1028 = vmatmul.msk.bf16.vlgmr.msra.gmra.mxu2 %vm206_vm8, %v166_v28 }
 0x271   :  { %v254_v30 = vpop.permute.xlu0 %253  ;;  %v326_v31 = vpop.permute.xlu2 %325 }
 0x272   :  { %v259_v32 = vsel %vm206_vm8, %v254_v30, 0  ;;  %v331_v33 = vsel %vm206_vm8, %v326_v31, 0 }
 0x273   :  { %268 = vmatpush.bf16.xpose.msra.mxu3 %v259_v32  ;;  %340 = vmatpush.bf16.xpose.msrb.mxu2 %v331_v33 }
 0x279   :  { %v350_v35 = vpop.permute.xlu1 %349  ;;  %v157_v36 = vpop.permute.xlu2 %156 }
 0x27a   :  { %v170_v37 = vpack.c.bf16 %v157_v36, %v157_v36  ;;  %1029 = vmatmul.msk.bf16.vlgmr.msra.gmra.mxu3 %vm206_vm8, %v167_v34  ;;  %v355_v38 = vsel %vm206_vm8, %v350_v35, 0 }
 0x27b   :  { %364 = vmatpush.bf16.xpose.msrb.mxu3 %v355_v38 }
 0x27c   :  { %1032 = vmatmul.msk.bf16.vlgmr.msrb.gmra.mxu2 %vm206_vm8, %v170_v37 }
 0x281   :  { %v278_v39 = vpop.permute.xlu0 %277  ;;  %v160_v40 = vpop.permute.xlu1 %159 }
 0x282   :  { %v283_v41 = vsel %vm206_vm8, %v278_v39, 0  ;;  %v171_v42 = vpack.c.bf16 %v160_v40, %v160_v40  ;;  %v163_v50 = vpop.permute.xlu2 %162 }
 0x283   :  { %292 = vmatpush.bf16.xpose.msrb.mxu0 %v283_v41  ;;  %v172_v52 = vpack.c.bf16 %v163_v50, %v163_v50 }
 0x289   :  { %v153_v43 = vpop.permute.xlu0 %152 }
 0x28a   :  { %v168_v44 = vpack.c.bf16 %v153_v43, %v153_v43  ;;  %v205_v45 = vpop.permute.xlu1 %204  ;;  %1033 = vmatmul.msk.bf16.vlgmr.msrb.gmra.mxu3 %vm206_vm8, %v171_v42 }
 0x28b   :  { %v211_v46 = vsel %vm206_vm8, %v205_v45, 0 }
 0x28c   :  { %220 = vmatpush.bf16.xpose.msra.mxu1 %v211_v46  ;;  %1030 = vmatmul.msk.bf16.vlgmr.msrb.gmra.mxu0 %vm206_vm8, %v168_v44 }
 0x291   :  { %v374_v47 = vpop.permute.xlu0 %373 }
 0x292   :  { %v379_v49 = vsel %vm206_vm8, %v374_v47, 0 }
 0x293   :  { %1027 = vmatmul.msk.bf16.vlgmr.msra.gmra.mxu1 %vm206_vm8, %v165_v48  ;;  %388 = vmatpush.bf16.xpose.msra.mxu0 %v379_v49 }
 0x299   :  { %v302_v51 = vpop.permute.xlu0 %301 }
 0x29a   :  { %v307_v53 = vsel %vm206_vm8, %v302_v51, 0 }
 0x29b   :  { %316 = vmatpush.bf16.xpose.msrb.mxu1 %v307_v53 }
 0x29c   :  { %1034 = vmatmul.msk.bf16.vlgmr.msra.gmra.mxu0 %vm206_vm8, %v172_v52 }
 0x2a3   :  { %1031 = vmatmul.msk.bf16.vlgmr.msrb.gmra.mxu1 %vm206_vm8, %v169_v55 }
 0x2df   :  { %v246_v56 = vpop.f32.mrf.mxu2 }
 0x2e0   :  { %v397_v14 = vsel %vm206_vm8, %v246_v56, -inf }
 0x2e7   :  { %v248_v54 = vpop.f32.mrf.mxu2 }
 0x2fd   :  { %v270_v57 = vpop.f32.mrf.mxu3 }
 0x2fe   :  { %v400_v59 = vsel %vm206_vm8, %v270_v57, -inf }
 0x2ff   :  { %401 = vmax.xlane.f32.xlu1 %v400_v59  ;;  %v342_v60 = vpop.f32.mrf.mxu2 }
 0x300   :  { %v409_v20 = vsel %vm206_vm8, %v342_v60, -inf }
 0x305   :  { %v272_v61 = vpop.f32.mrf.mxu3 }
 0x307   :  { %v344_v63 = vpop.f32.mrf.mxu2 }
 0x309   :  { %v294_v1 = vpop.f32.mrf.mxu0 }
 0x30a   :  { %v403_v3 = vsel %vm206_vm8, %v294_v1, -inf }
 0x30b   :  { %404 = vmax.xlane.f32.xlu0 %v403_v3 }
 0x30d   :  { %v1403_v5 = vpop.f32.mrf.mxu3 }
 0x30e   :  { %v412_v6 = vsel %vm206_vm8, %v1403_v5, -inf }
 0x30f   :  { %413 = vmax.xlane.f32.xlu1 %v412_v6 }
 0x310   :  { %v1407_v7 = vpop.f32.mrf.mxu1 }
 0x311   :  { %v296_v9 = vpop.f32.mrf.mxu0  ;;  %v394_v11 = vsel %vm206_vm8, %v1407_v7, -inf }
 0x312   :  { %395 = vmax.xlane.f32.xlu2 %v394_v11 }
 0x315   :  { %v368_v12 = vpop.f32.mrf.mxu3 }
 0x318   :  { %v224_v13 = vpop.f32.mrf.mxu1 }
 0x319   :  { %v390_v15 = vpop.f32.mrf.mxu0 }
 0x31a   :  { %398 = vmax.xlane.f32.xlu2 %v397_v14  ;;  %v415_v16 = vsel %vm206_vm8, %v390_v15, -inf }
 0x31b   :  { %416 = vmax.xlane.f32.xlu0 %v415_v16 }
 0x320   :  { %v318_v17 = vpop.f32.mrf.mxu1 }
 0x321   :  { %v392_v22 = vpop.f32.mrf.mxu0  ;;  %v406_v23 = vsel %vm206_vm8, %v318_v17, -inf }
 0x322   :  { %410 = vmax.xlane.f32.xlu2 %v409_v20 }
 0x323   :  { %407 = vmax.xlane.f32.xlu0 %v406_v23 }
 0x328   :  { %v320_v25 = vpop.f32.mrf.mxu1 }
 0x337   :  { %554 = vrot.lane.b32.xlu0 %v1351_v8, %s1219_s15 }
 0x33f   :  { %596 = vrot.lane.b32.xlu0 %v1359_v18, %s1219_s15 }
 0x347   :  { %617 = vrot.lane.b32.xlu0 %v1347_v4, %s1219_s15 }
 0x372   :  { %v402_v26 = vpop.xlane.xlu1 %401 }
 0x373   :  { %v420_v27 = vsub.f32 %v270_v57, %v402_v26 }
 0x375   :  { %v430_v28 = vmul.f32 1.442695, %v420_v27 }
 0x377   :  { %1148 = vpow2.f32 %v430_v28 }
 0x37d   :  { %v1421_v29 = vpop.eup %1148 }
 0x37e   :  { %v405_v30 = vpop.xlane.xlu0 %404  ;;  %v448_v31 = vsel %vm206_vm8, %v1421_v29, 0.0 }
 0x37f   :  { %v421_v32 = vsub.f32 %v294_v1, %v405_v30  ;;  %449 = vadd.xlane.f32.xlu0 %v448_v31 }
 0x381   :  { %v432_v33 = vmul.f32 1.442695, %v421_v32 }
 0x382   :  { %v414_v53 = vpop.xlane.xlu1 %413 }
 0x383   :  { %1150 = vpow2.f32 %v432_v33 }
 0x385   :  { %v396_v8 = vpop.xlane.xlu2 %395 }
 0x389   :  { %v1151_v34 = vpop.eup %1150 }
 0x38a   :  { %v451_v18 = vsel %vm206_vm8, %v1151_v34, 0.0 }
 0x38b   :  { %452 = vadd.xlane.f32.xlu2 %v451_v18 }
 0x38d   :  { %v399_v4 = vpop.xlane.xlu2 %398 }
 0x38e   :  { %v419_v35 = vsub.f32 %v246_v56, %v399_v4  ;;  %v417_v39 = vpop.xlane.xlu0 %416 }
 0x38f   :  { %v425_v48 = vsub.f32 %v390_v15, %v417_v39 }
 0x390   :  { %v428_v36 = vmul.f32 1.442695, %v419_v35 }
 0x391   :  { %v440_v49 = vmul.f32 1.442695, %v425_v48 }
 0x392   :  { %1152 = vpow2.f32 %v428_v36 }
 0x395   :  { %v411_v37 = vpop.xlane.xlu2 %410 }
 0x396   :  { %v423_v38 = vsub.f32 %v342_v60, %v411_v37  ;;  %v408_v44 = vpop.xlane.xlu0 %407 }
 0x397   :  { %v422_v50 = vsub.f32 %v318_v17, %v408_v44 }
 0x398   :  { %v1426_v40 = vpop.eup %1152  ;;  %v436_v41 = vmul.f32 1.442695, %v423_v38 }
 0x399   :  { %v445_v42 = vsel %vm206_vm8, %v1426_v40, 0.0  ;;  %v434_v51 = vmul.f32 1.442695, %v422_v50 }
 0x39a   :  { %1154 = vpow2.f32 %v436_v41  ;;  %446 = vadd.xlane.f32.xlu1 %v445_v42 }
 0x39b   :  { %1156 = vpow2.f32 %v440_v49 }
 0x39c   :  { %1158 = vpow2.f32 %v434_v51 }
 0x3a0   :  { %v1430_v43 = vpop.eup %1154 }
 0x3a1   :  { %v457_v45 = vsel %vm206_vm8, %v1430_v43, 0.0  ;;  %v1441_v52 = vpop.eup %1156 }
 0x3a2   :  { %458 = vadd.xlane.f32.xlu0 %v457_v45  ;;  %v463_v55 = vsel %vm206_vm8, %v1441_v52, 0.0  ;;  %v1447_v54 = vpop.eup %1158 }
 0x3a3   :  { %533 = vrot.lane.b32.xlu2 %v1341_v62, %s1219_s15  ;;  %v424_v62 = vsub.f32 %v1403_v5, %v414_v53  ;;  %v454_v57 = vsel %vm206_vm8, %v1447_v54, 0.0 }
 0x3a5   :  { %v438_v56 = vmul.f32 1.442695, %v424_v62 }
 0x3a7   :  { %1160 = vpow2.f32 %v438_v56 }
 0x3a9   :  { %v555_v46 = vpop.permute.xlu0 %554 }
 0x3aa   :  { %v560_v47 = vsel %vm495_vm9, %v555_v46, 0 }
 0x3ab   :  { %569 = vmatpush.bf16.msrb.mxu0 %v560_v47 }
 0x3ad   :  { %v1161_v59 = vpop.eup %1160 }
 0x3ae   :  { %v460_v61 = vsel %vm206_vm8, %v1161_v59, 0.0 }
 0x3b1   :  { %v597_v1 = vpop.permute.xlu0 %596 }
 0x3b2   :  { %v602_v26 = vsel %vm495_vm9, %v597_v1, 0 }
 0x3b3   :  { %512 = vrot.lane.b32.xlu1 %v1337_v58, %s1219_s15  ;;  %v418_v58 = vsub.f32 %v1407_v7, %v396_v8 }
 0x3b6   :  { %638 = vrot.lane.b32.xlu0 %v1369_v21, %s1219_s15  ;;  %v426_v21 = vmul.f32 1.442695, %v418_v58 }
 0x3b8   :  { %1162 = vpow2.f32 %v426_v21 }
 0x3b9   :  { %v618_v3 = vpop.permute.xlu0 %617 }
 0x3ba   :  { %v623_v15 = vsel %vm495_vm9, %v618_v3, 0 }
 0x3be   :  { %v1451_v60 = vpop.eup %1162 }
 0x3bf   :  { %v442_v63 = vsel %vm206_vm8, %v1451_v60, 0.0 }
 0x3cc   :  { %464 = vadd.xlane.f32.xlu2 %v463_v55 }
 0x3d4   :  { %455 = vadd.xlane.f32.xlu2 %v454_v57 }
 0x3dd   :  { %461 = vadd.xlane.f32.xlu1 %v460_v61 }
 0x3e0   :  { %443 = vadd.xlane.f32.xlu0 %v442_v63 }
 0x3ec   :  { %575 = vrot.lane.b32.xlu2 %v1375_v24, %s1219_s15 }
 0x3f2   :  { %v450_v5 = vpop.xlane.xlu0 %449 }
 0x3f3   :  { %1164 = vrcp.f32 %v450_v5 }
 0x3f6   :  { %490 = vrot.lane.b32.xlu1 %v1361_v19, %s1219_s15 }
 0x3f9   :  { %v1165_v7 = vpop.eup %1164 }
 0x3fa   :  { %v476_v11 = vmul.f32 %v1165_v7, %v1421_v29  ;;  %v1098_v7 = vld [vmem:[%s1585_s4 + $0x8] sm:$0xff] }
 0x3fc   :  { %v484_v24 = vpack.c.bf16 %v476_v11, %v476_v11 }
 0x3fe   :  { %v453_v6 = vpop.xlane.xlu2 %452 }
 0x3ff   :  { %1166 = vrcp.f32 %v453_v6 }
 0x405   :  { %v1167_v9 = vpop.eup %1166 }
 0x406   :  { %v477_v12 = vmul.f32 %v1167_v9, %v1151_v34  ;;  %v534_v13 = vpop.permute.xlu2 %533  ;;  %v1097_v9 = vld [vmem:[%s1585_s4] sm:$0xff] }
 0x407   :  { %v539_v14 = vsel %vm495_vm9, %v534_v13, 0 }
 0x408   :  { %v485_v16 = vpack.c.bf16 %v477_v12, %v477_v12  ;;  %548 = vmatpush.bf16.msra.mxu3 %v539_v14 }
 0x40a   :  { %1038 = vmatmul.msk.bf16.vlgmr.msrb.gmra.mxu0 %vm206_vm8, %v485_v16 }
 0x40b   :  { %1037 = vmatmul.msk.bf16.vlgmr.msra.gmra.mxu3 %vm206_vm8, %v484_v24 }
 0x40c   :  { %632 = vmatpush.bf16.msrb.mxu3 %v623_v15 }
 0x40d   :  { %v447_v19 = vpop.xlane.xlu1 %446 }
 0x40e   :  { %1168 = vrcp.f32 %v447_v19 }
 0x414   :  { %v1169_v20 = vpop.eup %1168 }
 0x415   :  { %v459_v17 = vpop.xlane.xlu0 %458  ;;  %v475_v22 = vmul.f32 %v1169_v20, %v1426_v40 }
 0x416   :  { %1170 = vrcp.f32 %v459_v17 }
 0x417   :  { %v483_v27 = vpack.c.bf16 %v475_v22, %v475_v22 }
 0x41c   :  { %v1171_v30 = vpop.eup %1170 }
 0x41d   :  { %v479_v31 = vmul.f32 %v1171_v30, %v1430_v43 }
 0x41f   :  { %v487_v32 = vpack.c.bf16 %v479_v31, %v479_v31 }
 0x425   :  { %v513_v23 = vpop.permute.xlu1 %512 }
 0x426   :  { %v518_v25 = vsel %vm495_vm9, %v513_v23, 0 }
 0x427   :  { %527 = vmatpush.bf16.msra.mxu2 %v518_v25 }
 0x428   :  { %v639_v28 = vpop.permute.xlu0 %638 }
 0x429   :  { %v644_v29 = vsel %vm495_vm9, %v639_v28, 0 }
 0x42a   :  { %1036 = vmatmul.msk.bf16.vlgmr.msra.gmra.mxu2 %vm206_vm8, %v483_v27  ;;  %653 = vmatpush.bf16.msra.mxu0 %v644_v29  ;;  %v1137_v29 = vld [vmem:[%s1586_s5] ss:$0 sm:$0xff]  ;;  %s1223_s5 = smov [#allocation2]  }
 0x42b   :  { %611 = vmatpush.bf16.msrb.mxu2 %v602_v26  ;;  %s1004_s24 = sshll.u32 %s1223_s5, 4  ;;  %s1005_s24 = int_to_ptr.vmem [resolvable:$true] %s1004_s24 }
 0x43a   :  { %1040 = vmatmul.msk.bf16.vlgmr.msrb.gmra.mxu2 %vm206_vm8, %v487_v32 }
 0x43f   :  { %v465_v33 = vpop.xlane.xlu2 %464 }
 0x440   :  { %1172 = vrcp.f32 %v465_v33 }
 0x446   :  { %v1173_v8 = vpop.eup %1172 }
 0x447   :  { %v481_v34 = vmul.f32 %v1173_v8, %v1441_v52  ;;  %v456_v39 = vpop.xlane.xlu2 %455 }
 0x449   :  { %v489_v18 = vpack.c.bf16 %v481_v34, %v481_v34 }
 0x44b   :  { %1042 = vmatmul.msk.bf16.vlgmr.msra.gmra.mxu0 %vm206_vm8, %v489_v18 }
 0x44f   :  { %v576_v41 = vpop.permute.xlu2 %575 }
 0x450   :  { %v462_v4 = vpop.xlane.xlu1 %461  ;;  %v581_v45 = vsel %vm495_vm9, %v576_v41, 0 }
 0x451   :  { %1174 = vrcp.f32 %v462_v4 }
 0x453   :  { %v444_v38 = vpop.xlane.xlu0 %443 }
 0x454   :  { %1176 = vrcp.f32 %v444_v38 }
 0x455   :  { %1178 = vrcp.f32 %v456_v39 }
 0x457   :  { %v1175_v35 = vpop.eup %1174 }
 0x458   :  { %v480_v36 = vmul.f32 %v1175_v35, %v1161_v59 }
 0x45a   :  { %v488_v37 = vpack.c.bf16 %v480_v36, %v480_v36  ;;  %v1177_v40 = vpop.eup %1176 }
 0x45b   :  { %v474_v42 = vmul.f32 %v1177_v40, %v1451_v60  ;;  %v1179_v47 = vpop.eup %1178 }
 0x45c   :  { %1041 = vmatmul.msk.bf16.vlgmr.msrb.gmra.mxu3 %vm206_vm8, %v488_v37  ;;  %v478_v48 = vmul.f32 %v1179_v47, %v1447_v54 }
 0x45d   :  { %v482_v46 = vpack.c.bf16 %v474_v42, %v474_v42 }
 0x45e   :  { %v486_v49 = vpack.c.bf16 %v478_v48, %v478_v48 }
 0x468   :  { %v491_v43 = vpop.permute.xlu1 %490 }
 0x469   :  { %v497_v44 = vsel %vm495_vm9, %v491_v43, 0  ;;  %v1100_v43 = vld [vmem:[%s1589_s8 + $0x8] sm:$0xff] }
 0x46a   :  { %506 = vmatpush.bf16.msra.mxu1 %v497_v44  ;;  %817 = vmatpush.bf16.msra.mxu2 %v1100_v43  ;;  %v1103_v43 = vld [vmem:[%s1591_s10 + $0x10] sm:$0xff] }
 0x46d   :  { %1035 = vmatmul.msk.bf16.vlgmr.msra.gmra.mxu1 %vm206_vm8, %v482_v46  ;;  %v1099_v46 = vld [vmem:[%s1589_s8] sm:$0xff]  ;;  %s1006_s8 = sshll.u32 %s1593_s12, 4  ;;  %s1007_s8 = int_to_ptr.hbm [resolvable:$true] %s1006_s8 }
 0x46e   :  { %590 = vmatpush.bf16.msrb.mxu1 %v581_v45  ;;  %818 = vmatpush.bf16.msra.mxu2 %v1099_v46 }
 0x472   :  { %721 = vmatpush.bf16.msra.mxu1 %v1098_v7 }
 0x476   :  { %722 = vmatpush.bf16.msra.mxu1 %v1097_v9 }
 0x47d   :  { %1039 = vmatmul.msk.bf16.vlgmr.msrb.gmra.mxu1 %vm206_vm8, %v486_v49 }
 0x487   :  { %v571_v50 = vpop.f32.mrf.mxu0 }
 0x48e   :  { %v550_v51 = vpop.f32.mrf.mxu3 }
 0x48f   :  { %v573_v52 = vpop.f32.mrf.mxu0 }
 0x496   :  { %v552_v53 = vpop.f32.mrf.mxu3 }
 0x4ad   :  { %v529_v62 = vpop.f32.mrf.mxu2 }
 0x4b5   :  { %v531_v55 = vpop.f32.mrf.mxu2 }
 0x4bd   :  { %v613_v58 = vpop.f32.mrf.mxu2 }
 0x4be   :  { %v1120_v56 = vpack.i.bf16 %v613_v58, %v529_v62 }
 0x4c0   :  { %1121 = vrot.lane.b32.xlu1 %v1120_v56, %s1220_s16 }
 0x4c5   :  { %v615_v21 = vpop.f32.mrf.mxu2 }
 0x4c8   :  { %v655_v57 = vpop.f32.mrf.mxu0 }
 0x4c9   :  { %v1130_v59 = vpack.i.bf16 %v655_v57, %v571_v50 }
 0x4cb   :  { %1131 = vrot.lane.b32.xlu2 %v1130_v59, %s1221_s17 }
 0x4d0   :  { %v657_v54 = vpop.f32.mrf.mxu0 }
 0x4df   :  { %v634_v60 = vpop.f32.mrf.mxu3 }
 0x4e0   :  { %v1125_v61 = vpack.i.bf16 %v634_v60, %v550_v51 }
 0x4e2   :  { %1126 = vrot.lane.b32.xlu1 %v1125_v61, %s1222_s18 }
 0x4e7   :  { %v636_v63 = vpop.f32.mrf.mxu3 }
 0x4ea   :  { %v508_v1 = vpop.f32.mrf.mxu1 }
 0x4f2   :  { %v510_v3 = vpop.f32.mrf.mxu1 }
 0x4f3   :  { %v1139_v3 = vld [vmem:[%s1588_s7] ss:$0 sm:$0xff] }
 0x4fa   :  { %v592_v5 = vpop.f32.mrf.mxu1 }
 0x502   :  { %v594_v6 = vpop.f32.mrf.mxu1 }
 0x525   :  { %v1132_v14 = vpop.permute.xlu2 %1131 }
 0x526   :  { %v1134_v19 = vunpack.i.h.bf16 %v1132_v14  ;;  %v1133_v17 = vunpack.i.l.bf16 %v1132_v14 }
 0x532   :  { %v1122_v11 = vpop.permute.xlu1 %1121 }
 0x533   :  { %v1124_v12 = vunpack.i.h.bf16 %v1122_v11  ;;  %v1123_v13 = vunpack.i.l.bf16 %v1122_v11 }
 0x535   :  { %v671_v20 = vsel %vm206_vm8, %v508_v1, %v1123_v13  ;;  %v688_v22 = vsel %vm206_vm8, %v592_v5, %v1124_v12  ;;  %v1140_v13 = vld [vmem:[%s1590_s9] ss:$0 sm:$0xff] }
 0x554   :  { %v1127_v15 = vpop.permute.xlu1 %1126 }
 0x555   :  { %v1129_v16 = vunpack.i.h.bf16 %v1127_v15  ;;  %v1128_v24 = vunpack.i.l.bf16 %v1127_v15 }
 0x557   :  { %v673_v23 = vsel %vm672_vm10, %v671_v20, %v1128_v24  ;;  %v689_v25 = vsel %vm672_vm10, %v688_v22, %v1129_v16  ;;  %v1108_v16 = vld [vmem:[%s1591_s10 + $0x38] sm:$0xff] }
 0x558   :  { %v675_v26 = vsel %vm674_vm11, %v673_v23, %v1133_v17  ;;  %v690_v27 = vsel %vm674_vm11, %v689_v25, %v1134_v19  ;;  %982 = vmatpush.bf16.msra.mxu3 %v1108_v16  ;;  %v1107_v17 = vld [vmem:[%s1591_s10 + $0x30] sm:$0xff] }
 0x559   :  { %v691_v28 = vpack.c.bf16 %v690_v27, %v675_v26  ;;  %v1106_v27 = vld [vmem:[%s1591_s10 + $0x28] sm:$0xff] }
 0x55b   :  { %1051 = vmatmul.msk.bf16.vlgmr.msra.gmra.mxu1 %vm47_vm0, %v691_v28 }
 0x55c   :  { %983 = vmatpush.bf16.msra.mxu3 %v1107_v17 }
 0x560   :  { %984 = vmatpush.bf16.msra.mxu3 %v1106_v27 }
 0x5d8   :  { %v724_v30 = vpop.f32.mrf.mxu1 }
 0x5d9   :  { %v725_v31 = vadd.f32 %v1137_v29, %v724_v30 }
 0x5db   :  { %v1495_v32 = vadd.f32 %v725_v31, %v1293_v0 }
 0x5dd   :  { %v733_v33 = vsel %vm47_vm0, %v1495_v32, 0.0 }
 0x5de   :  { %734 = vadd.xlane.f32.xlu0 %v733_v33  ;;  %v1105_v33 = vld [vmem:[%s1591_s10 + $0x20] sm:$0xff] }
 0x5df   :  { %985 = vmatpush.bf16.msra.mxu3 %v1105_v33 }
 0x5e0   :  { %v726_v8 = vpop.f32.mrf.mxu1 }
 0x5e1   :  { %v727_v34 = vadd.f32 %v1137_v29, %v726_v8 }
 0x5e3   :  { %v1500_v18 = vadd.f32 %v727_v34, %v1300_v2 }
 0x5e5   :  { %v736_v4 = vsel %vm47_vm0, %v1500_v18, 0.0 }
 0x5e6   :  { %737 = vadd.xlane.f32.xlu1 %v736_v4 }
 0x651   :  { %v735_v35 = vpop.xlane.xlu0 %734 }
 0x652   :  { %v739_v36 = vmul.f32 %v735_v35, %v1304_v10 }
 0x654   :  { %v741_v37 = vsub.f32 %v1495_v32, %v739_v36 }
 0x656   :  { %v743_v0 = vmul.f32 %v741_v37, %v741_v37 }
 0x658   :  { %v745_v38 = vsel %vm47_vm0, %v743_v0, 0.0 }
 0x659   :  { %v738_v39 = vpop.xlane.xlu1 %737  ;;  %746 = vadd.xlane.f32.xlu2 %v745_v38 }
 0x65a   :  { %v740_v40 = vmul.f32 %v738_v39, %v1304_v10 }
 0x65c   :  { %v742_v41 = vsub.f32 %v1500_v18, %v740_v40 }
 0x65e   :  { %v744_v2 = vmul.f32 %v742_v41, %v742_v41 }
 0x660   :  { %v748_v42 = vsel %vm47_vm0, %v744_v2, 0.0 }
 0x661   :  { %749 = vadd.xlane.f32.xlu0 %v748_v42 }
 0x6cc   :  { %v747_v44 = vpop.xlane.xlu2 %746 }
 0x6cd   :  { %v751_v45 = vmul.f32 %v747_v44, %v1304_v10 }
 0x6cf   :  { %v753_v47 = vadd.f32 1e-05, %v751_v45 }
 0x6d1   :  { %1180 = vrsqrt.f32 %v753_v47  ;;  %vm761_vm13 = vweird.f32 %v753_v47 }
 0x6d4   :  { %v750_v48 = vpop.xlane.xlu0 %749 }
 0x6d5   :  { %v752_v49 = vmul.f32 %v750_v48, %v1304_v10  ;;  %v1138_v10 = vld [vmem:[%s1587_s6] ss:$0 sm:$0xff] }
 0x6d7   :  { %v1181_v50 = vpop.eup %1180  ;;  %v754_v51 = vadd.f32 1e-05, %v752_v49 }
 0x6d8   :  { %v756_v52 = vmul.f32 %v1181_v50, %v753_v47  ;;  %vm762_vm12 = vweird.f32 %v1181_v50 }
 0x6d9   :  { %1182 = vrsqrt.f32 %v754_v51  ;;  %vm763_vm14 = vmor %vm761_vm13, %vm762_vm12  ;;  %vm771_vm1 = vweird.f32 %v754_v51 }
 0x6da   :  { %v757_v53 = vmul.f32 %v1181_v50, %v756_v52 }
 0x6dc   :  { %v758_v62 = vmul.f32 0.5, %v757_v53 }
 0x6de   :  { %v759_v55 = vsub.f32 1.5, %v758_v62 }
 0x6df   :  { %v1183_v58 = vpop.eup %1182 }
 0x6e0   :  { %v760_v56 = vmul.f32 %v1181_v50, %v759_v55  ;;  %v766_v21 = vmul.f32 %v1183_v58, %v754_v51  ;;  %vm772_vm15 = vweird.f32 %v1183_v58  ;;  %v1102_v51 = vld [vmem:[%s1591_s10 + $0x8] sm:$0xff] }
 0x6e1   :  { %vm773_vm2 = vmor %vm771_vm1, %vm772_vm15 }
 0x6e2   :  { %v767_v57 = vmul.f32 %v1183_v58, %v766_v21  ;;  %v764_v59 = vsel %vm763_vm14, %v1181_v50, %v760_v56  ;;  %v1101_v56 = vld [vmem:[%s1591_s10] sm:$0xff] }
 0x6e3   :  { %v775_v61 = vmul.f32 %v764_v59, %v741_v37  ;;  %v1104_v37 = vld [vmem:[%s1591_s10 + $0x18] sm:$0xff] }
 0x6e4   :  { %v768_v54 = vmul.f32 0.5, %v767_v57  ;;  %986 = vmatpush.bf16.msra.mxu3 %v1104_v37 }
 0x6e5   :  { %v780_v5 = vmul.f32 %v1138_v10, %v775_v61 }
 0x6e6   :  { %v769_v60 = vsub.f32 1.5, %v768_v54 }
 0x6e7   :  { %v785_v9 = vadd.f32 %v1139_v3, %v780_v5 }
 0x6e8   :  { %v770_v63 = vmul.f32 %v1183_v58, %v769_v60  ;;  %987 = vmatpush.bf16.msra.mxu3 %v1103_v43 }
 0x6ea   :  { %v774_v1 = vsel %vm773_vm2, %v1183_v58, %v770_v63 }
 0x6eb   :  { %v776_v6 = vmul.f32 %v774_v1, %v742_v41 }
 0x6ec   :  { %988 = vmatpush.bf16.msra.mxu3 %v1102_v51 }
 0x6ed   :  { %v781_v7 = vmul.f32 %v1138_v10, %v776_v6 }
 0x6ef   :  { %v786_v11 = vadd.f32 %v1139_v3, %v781_v7 }
 0x6f0   :  { %989 = vmatpush.bf16.msra.mxu3 %v1101_v56 }
 0x6f1   :  { %v787_v12 = vpack.c.bf16 %v786_v11, %v785_v9 }
 0x6f3   :  { %1060 = vmatmul.msk.bf16.vlgmr.msra.gmra.mxu2 %vm47_vm0, %v787_v12 }
 0x776   :  { %v820_v14 = vpop.f32.mrf.mxu2 }
 0x777   :  { %v1528_v15 = vadd.f32 %v1140_v13, %v820_v14 }
 0x779   :  { %v1534_v24 = vmul.f32 0.70710677, %v1528_v15 }
 0x77b   :  { %v829_v19 = vmul.f32 %v1534_v24, %v1534_v24 }
 0x77d   :  { %v830_v20 = vmin.f32 %v829_v19, 16.0 }
 0x77e   :  { %v822_v22 = vpop.f32.mrf.mxu2 }
 0x77f   :  { %v831_v23 = vmul.f32 2.1237322e-06, %v830_v20  ;;  %v842_v25 = vmul.f32 3.8918573e-05, %v830_v20  ;;  %v1541_v26 = vadd.f32 %v1140_v13, %v822_v22 }
 0x781   :  { %v832_v28 = vadd.f32 0.00028619796, %v831_v23  ;;  %v843_v29 = vadd.f32 0.001143296, %v842_v25  ;;  %v1547_v30 = vmul.f32 0.70710677, %v1541_v26 }
 0x783   :  { %v844_v31 = vmul.f32 %v843_v29, %v830_v20  ;;  %v869_v8 = vmul.f32 %v1547_v30, %v1547_v30  ;;  %v833_v34 = vmul.f32 %v832_v28, %v830_v20 }
 0x785   :  { %v845_v4 = vadd.f32 0.014752088, %v844_v31  ;;  %v870_v35 = vmin.f32 %v869_v8, 16.0  ;;  %v834_v39 = vadd.f32 0.0036580483, %v833_v34 }
 0x787   :  { %v846_v36 = vmul.f32 %v845_v4, %v830_v20  ;;  %v871_v0 = vmul.f32 2.1237322e-06, %v870_v35  ;;  %v882_v38 = vmul.f32 3.8918573e-05, %v870_v35  ;;  %v835_v46 = vmul.f32 %v834_v39, %v830_v20 }
 0x789   :  { %v847_v40 = vadd.f32 0.112945676, %v846_v36  ;;  %v872_v41 = vadd.f32 0.00028619796, %v871_v0  ;;  %v883_v2 = vadd.f32 0.001143296, %v882_v38 }
 0x78a   :  { %v836_v53 = vadd.f32 0.05243302, %v835_v46 }
 0x78b   :  { %v848_v42 = vmul.f32 %v847_v40, %v830_v20  ;;  %v873_v44 = vmul.f32 %v872_v41, %v870_v35  ;;  %v884_v45 = vmul.f32 %v883_v2, %v870_v35  ;;  %v825_v40 = vmul.f32 0.5, %v1528_v15 }
 0x78c   :  { %v837_v57 = vmul.f32 %v836_v53, %v830_v20  ;;  %v826_v41 = vmul.f32 0.5, %v1541_v26 }
 0x78d   :  { %v849_v47 = vadd.f32 0.4994258, %v848_v42  ;;  %v874_v48 = vadd.f32 0.0036580483, %v873_v44  ;;  %v885_v49 = vadd.f32 0.014752088, %v884_v45 }
 0x78e   :  { %v838_v61 = vadd.f32 0.18741608, %v837_v57  ;;  %v1141_v45 = vld [vmem:[%s1592_s11] ss:$0 sm:$0xff]  ;;  %s1224_s11 = smov 128  }
 0x78f   :  { %v850_v50 = vmul.f32 %v849_v47, %v830_v20  ;;  %v886_v52 = vmul.f32 %v885_v49, %v870_v35  ;;  %v875_v55 = vmul.f32 %v874_v48, %v870_v35 }
 0x790   :  { %v839_v6 = vmul.f32 %v838_v61, %v830_v20 }
 0x791   :  { %v851_v62 = vadd.f32 1.0, %v850_v50  ;;  %v887_v58 = vadd.f32 0.112945676, %v886_v52  ;;  %v876_v59 = vadd.f32 0.05243302, %v875_v55 }
 0x792   :  { %v840_v14 = vadd.f32 1.1283791, %v839_v6 }
 0x793   :  { %1184 = vrcp.f32 %v851_v62  ;;  %v888_v21 = vmul.f32 %v887_v58, %v870_v35  ;;  %v877_v1 = vmul.f32 %v876_v59, %v870_v35  ;;  %v863_v9 = vand.u32 2147483648, %v851_v62 }
 0x794   :  { %v861_v12 = vand.u32 2147483647, %v851_v62  ;;  %vm857_vm4 = vweird.f32 %v851_v62  ;;  %v841_v27 = vmul.f32 %v840_v14, %v1534_v24 }
 0x795   :  { %v889_v54 = vadd.f32 0.4994258, %v888_v21  ;;  %v878_v11 = vadd.f32 0.18741608, %v877_v1  ;;  %v864_v17 = vor.u32 1.1754944e-38, %v863_v9 }
 0x796   :  { %vm862_vm6 = vcmp.eq.f32.partialorder %v861_v12, 8.507059e+37 }
 0x797   :  { %v890_v60 = vmul.f32 %v889_v54, %v870_v35  ;;  %v879_v22 = vmul.f32 %v878_v11, %v870_v35 }
 0x799   :  { %v1185_v10 = vpop.eup %1184  ;;  %v891_v3 = vadd.f32 1.0, %v890_v60  ;;  %v880_v20 = vadd.f32 1.1283791, %v879_v22 }
 0x79a   :  { %v853_v63 = vmul.f32 %v1185_v10, %v851_v62  ;;  %vm858_vm3 = vweird.f32 %v1185_v10 }
 0x79b   :  { %1186 = vrcp.f32 %v891_v3  ;;  %vm859_vm5 = vmor %vm857_vm4, %vm858_vm3  ;;  %v903_v29 = vand.u32 2147483648, %v891_v3  ;;  %v901_v8 = vand.u32 2147483647, %v891_v3  ;;  %vm897_vm8 = vweird.f32 %v891_v3 }
 0x79c   :  { %v854_v5 = vsub.f32 1.0, %v853_v63  ;;  %v881_v37 = vmul.f32 %v880_v20, %v1547_v30 }
 0x79d   :  { %v904_v4 = vor.u32 1.1754944e-38, %v903_v29  ;;  %vm902_vm10 = vcmp.eq.f32.partialorder %v901_v8, 8.507059e+37 }
 0x79e   :  { %v855_v7 = vmul.f32 %v1185_v10, %v854_v5 }
 0x7a0   :  { %v856_v13 = vadd.f32 %v1185_v10, %v855_v7 }
 0x7a1   :  { %v1187_v16 = vpop.eup %1186 }
 0x7a2   :  { %v860_v19 = vsel %vm859_vm5, %v1185_v10, %v856_v13  ;;  %v893_v23 = vmul.f32 %v1187_v16, %v891_v3  ;;  %vm898_vm7 = vweird.f32 %v1187_v16 }
 0x7a3   :  { %v865_v25 = vsel %vm862_vm6, %v864_v17, %v860_v19  ;;  %vm899_vm9 = vmor %vm897_vm8, %vm898_vm7 }
 0x7a4   :  { %v894_v28 = vsub.f32 1.0, %v893_v23  ;;  %v866_v31 = vmul.f32 %v865_v25, %v841_v27 }
 0x7a6   :  { %v895_v33 = vmul.f32 %v1187_v16, %v894_v28  ;;  %v1061_v36 = vclamps-f32 %v866_v31, 1.0 }
 0x7a8   :  { %v896_v34 = vadd.f32 %v1187_v16, %v895_v33  ;;  %v909_v39 = vadd.f32 1.0, %v1061_v36 }
 0x7aa   :  { %v900_v35 = vsel %vm899_vm9, %v1187_v16, %v896_v34  ;;  %v911_v42 = vmul.f32 %v909_v39, %v825_v40 }
 0x7ab   :  { %v905_v0 = vsel %vm902_vm10, %v904_v4, %v900_v35 }
 0x7ac   :  { %v906_v38 = vmul.f32 %v905_v0, %v881_v37 }
 0x7ae   :  { %v1062_v24 = vclamps-f32 %v906_v38, 1.0 }
 0x7b0   :  { %v910_v2 = vadd.f32 1.0, %v1062_v24 }
 0x7b2   :  { %v912_v43 = vmul.f32 %v910_v2, %v826_v41 }
 0x7b4   :  { %v913_v44 = vpack.c.bf16 %v912_v43, %v911_v42 }
 0x7b6   :  { %990 = vmatmul.bf16.vlgmr.msra.gmra.mxu3 %v913_v44 }
 0x839   :  { %v991_v30 = vpop.f32.mrf.mxu3 }
 0x83a   :  { %v992_v46 = vadd.f32 %v1141_v45, %v991_v30 }
 0x83c   :  { %v996_v47 = vadd.f32 %v992_v46, %v1495_v32 }
 0x83e   :  { %998 = vst.msk [vmem:[#allocation2] sm:$0xff] %vm47_vm0, %v996_v47 }
 0x841   :  { %v993_v15 = vpop.f32.mrf.mxu3 }
 0x842   :  { %v994_v26 = vadd.f32 %v1141_v45, %v993_v15 }
 0x844   :  { %v997_v48 = vadd.f32 %v994_v26, %v1500_v18 }
 0x846   :  { %999 = vst.msk [vmem:[#allocation2 + $0x8] sm:$0xff] %vm47_vm0, %v997_v48 }
 0x847   :  { %1012 = dma.vmem_to_hbm [thread:$0]  %s1005_s24, 256, %s1007_s8, [#allocation3], %s1224_s11, %s1224_s11, %s1220_s16  }
 0x848   :  { %1212 = dma.done.wait [#allocation3], 256  }
 0x849   :  { %1213 = vsyncadd [#allocation3], 4294967040 }
 0x84a   :  { %1017 = vsyncpa [#allocation3], 1 }

</bundles_post_ra>
